<compile_context>
chip_gen: v7x
topology: tpu7x:2x2x1
jax: 0.10.0
libtpu: 0.0.40
codegen_flags: <defaults>
</compile_context>

<pallas_src>
import jax
import jax.numpy as jnp
from jax import lax
from jax.experimental import pallas as pl
from jax.experimental.pallas import tpu as pltpu


def _round_up(x, m):
    return ((x + m - 1) // m) * m


# ----------------------------------------------------------------------------
# Pallas kernels
# ----------------------------------------------------------------------------
def _conv_mm_kernel(w_ref, p_ref, b_ref, o_ref):
    # o = relu(W @ P + b)   with W:(Mp,Kp), P:(Kp,tn), b:(Mp,1) column bias
    acc = jnp.dot(w_ref[...], p_ref[...], preferred_element_type=jnp.float32)
    o_ref[...] = jnp.maximum(acc + b_ref[...], 0.0).astype(o_ref.dtype)


def _head_kernel(x_ref, w1_ref, b1_ref, w2_ref, b2_ref, o_ref):
    # Fused: o = relu(x @ W1 + b1) @ W2 + b2   (both FC layers in one launch)
    h = jnp.dot(x_ref[...], w1_ref[...], preferred_element_type=jnp.float32)
    h = jnp.maximum(h + b1_ref[...], 0.0)
    o = jnp.dot(h, w2_ref[...], preferred_element_type=jnp.float32)
    o_ref[...] = (o + b2_ref[...]).astype(o_ref.dtype)


# ----------------------------------------------------------------------------
# Pallas wrappers
# ----------------------------------------------------------------------------
def _conv_matmul(w_pad, p_pad, b_col):
    """relu(W @ P + b). W:(Mp,Kp) pre-padded, P:(Kp,Np) padded, b:(Mp,1)."""
    mp, kp = w_pad.shape
    kp2, np_ = p_pad.shape
    assert kp == kp2
    # Single lane block when small; tile along the (parallel) N axis otherwise.
    if np_ <= 2048:
        tn = np_
    elif np_ % 1024 == 0:
        tn = 1024
    elif np_ % 512 == 0:
        tn = 512
    else:
        tn = 128
    grid = (np_ // tn,)
    return pl.pallas_call(
        _conv_mm_kernel,
        out_shape=jax.ShapeDtypeStruct((mp, np_), jnp.float32),
        grid_spec=pltpu.PrefetchScalarGridSpec(
            num_scalar_prefetch=0,
            grid=grid,
            in_specs=[
                pl.BlockSpec((mp, kp), lambda j: (0, 0)),
                pl.BlockSpec((kp, tn), lambda j: (0, j)),
                pl.BlockSpec((mp, 1), lambda j: (0, 0)),
            ],
            out_specs=pl.BlockSpec((mp, tn), lambda j: (0, j)),
        ),
        compiler_params=pltpu.CompilerParams(
            dimension_semantics=("parallel",)),
    )(w_pad, p_pad, b_col)


def conv2d_relu(x, w_pad, b_col, c):
    """x: (N, Cin, H, W) -> relu(conv(x)) in NCHW, via im2col + Pallas matmul."""
    nb, cin, h, w = x.shape
    k = c["k"]
    assert cin == c["cin"]
    ho, wo = h - k + 1, w - k + 1
    kk = cin * k * k
    # Native im2col; output feature dim is ordered (ci, ky, kx) which matches
    # the PyTorch weight flatten order used in prepare_params().
    patches = lax.conv_general_dilated_patches(
        x, filter_shape=(k, k), window_strides=(1, 1), padding="VALID",
        dimension_numbers=("NCHW", "OIHW", "NCHW"))  # (nb, kk, ho, wo)
    ns = nb * ho * wo
    nsp = _round_up(ns, 128)
    p2 = patches.transpose(1, 0, 2, 3).reshape(kk, ns)
    p2 = jnp.pad(p2, ((0, c["kp"] - kk), (0, nsp - ns)))
    y = _conv_matmul(w_pad, p2, b_col)                 # (mp, nsp), lane-dense
    y = y[:c["cout"], :ns].reshape(c["cout"], nb, ho, wo)
    return y.transpose(1, 0, 2, 3)                     # back to NCHW


def head_pallas(x_flat, arrays, hc):
    """Fused head1(+ReLU)+head2 in a single Pallas call."""
    nb, lin = x_flat.shape
    assert lin == hc["lin"]
    mp = _round_up(nb, 8)
    xp = jnp.pad(x_flat, ((0, mp - nb), (0, hc["lin_p"] - lin)))
    lin_p, hid_p, out_p = hc["lin_p"], hc["hid_p"], hc["out_p"]
    out = pl.pallas_call(
        _head_kernel,
        out_shape=jax.ShapeDtypeStruct((mp, out_p), jnp.float32),
        grid_spec=pltpu.PrefetchScalarGridSpec(
            num_scalar_prefetch=0,
            grid=(1,),
            in_specs=[
                pl.BlockSpec((mp, lin_p), lambda i: (0, 0)),
                pl.BlockSpec((lin_p, hid_p), lambda i: (0, 0)),
                pl.BlockSpec((1, hid_p), lambda i: (0, 0)),
                pl.BlockSpec((hid_p, out_p), lambda i: (0, 0)),
                pl.BlockSpec((1, out_p), lambda i: (0, 0)),
            ],
            out_specs=pl.BlockSpec((mp, out_p), lambda i: (0, 0)),
        ),
        compiler_params=pltpu.CompilerParams(
            dimension_semantics=("arbitrary",)),
    )(xp, arrays["head1_w"], arrays["head1_b"],
      arrays["head2_w"], arrays["head2_b"])
    return out[:nb, :hc["n_out"]]


# ----------------------------------------------------------------------------
# Parameter init (PyTorch-default-style uniform +-1/sqrt(fan_in)) and one-time
# weight preparation (flatten / transpose / pad hoisted OUT of the forward).
# ----------------------------------------------------------------------------
def init_params(key, *, h, w, in_channels, hidden_fc, outputs):
    def conv_size(s, k=3, stride=1):
        return (s - (k - 1) - 1) // stride + 1

    convw = conv_size(conv_size(conv_size(w)))
    convh = conv_size(conv_size(conv_size(h)))
    lin = convw * convh * 32

    ks = jax.random.split(key, 10)

    def u(k_, shape, fan_in):
        bnd = 1.0 / jnp.sqrt(jnp.float32(fan_in))
        return jax.random.uniform(k_, shape, jnp.float32, -bnd, bnd)

    return {
        "conv1_w": u(ks[0], (16, in_channels, 3, 3), in_channels * 9),
        "conv1_b": u(ks[1], (16,), in_channels * 9),
        "conv2_w": u(ks[2], (32, 16, 3, 3), 16 * 9),
        "conv2_b": u(ks[3], (32,), 16 * 9),
        "conv3_w": u(ks[4], (32, 32, 3, 3), 32 * 9),
        "conv3_b": u(ks[5], (32,), 32 * 9),
        "head1_w": u(ks[6], (hidden_fc, lin), lin),
        "head1_b": u(ks[7], (hidden_fc,), lin),
        "head2_w": u(ks[8], (outputs, hidden_fc), hidden_fc),
        "head2_b": u(ks[9], (outputs,), hidden_fc),
    }


def prepare_params(raw):
    """One-time prep: flatten/transpose/pad all weights to MXU-friendly tiles."""
    arrays, cfg = {}, {}
    for name in ("conv1", "conv2", "conv3"):
        w = raw[name + "_w"].astype(jnp.float32)   # (Cout, Cin, k, k)
        b = raw[name + "_b"].astype(jnp.float32)
        cout, cin, k, _ = w.shape
        kk = cin * k * k
        kp = _round_up(kk, 128)
        mp = _round_up(cout, 8)
        arrays[name + "_w"] = jnp.pad(
            w.reshape(cout, kk), ((0, mp - cout), (0, kp - kk)))
        arrays[name + "_b"] = jnp.pad(b, (0, mp - cout)).reshape(mp, 1)
        cfg[name] = dict(cout=cout, cin=cin, k=k, kp=kp)

    w1 = raw["head1_w"].astype(jnp.float32)        # (hidden, lin)
    b1 = raw["head1_b"].astype(jnp.float32)
    w2 = raw["head2_w"].astype(jnp.float32)        # (out, hidden)
    b2 = raw["head2_b"].astype(jnp.float32)
    hidden, lin = w1.shape
    n_out = w2.shape[0]
    lin_p = _round_up(lin, 128)
    hid_p = _round_up(hidden, 128)
    out_p = _round_up(n_out, 128)
    arrays["head1_w"] = jnp.pad(w1.T, ((0, lin_p - lin), (0, hid_p - hidden)))
    arrays["head1_b"] = jnp.pad(b1, (0, hid_p - hidden)).reshape(1, hid_p)
    arrays["head2_w"] = jnp.pad(w2.T, ((0, hid_p - hidden), (0, out_p - n_out)))
    arrays["head2_b"] = jnp.pad(b2, (0, out_p - n_out)).reshape(1, out_p)
    cfg["head"] = dict(lin=lin, hidden=hidden, n_out=n_out,
                       lin_p=lin_p, hid_p=hid_p, out_p=out_p)
    return arrays, cfg


# ----------------------------------------------------------------------------
# Forward pass (matches ConvNet.forward)
# ----------------------------------------------------------------------------
def net_forward(arrays, cfg, x):
    x = conv2d_relu(x, arrays["conv1_w"], arrays["conv1_b"], cfg["conv1"])
    x = conv2d_relu(x, arrays["conv2_w"], arrays["conv2_b"], cfg["conv2"])
    x = conv2d_relu(x, arrays["conv3_w"], arrays["conv3_b"], cfg["conv3"])
    x = x.reshape(x.shape[0], -1)              # per-sample (C, H, W) order
    return head_pallas(x, arrays, cfg["head"])


# Pure-JAX reference for a sanity check.
def reference_forward(params, x):
    def conv(x, w, b):
        y = lax.conv_general_dilated(
            x, w, window_strides=(1, 1), padding="VALID",
            dimension_numbers=("NCHW", "OIHW", "NCHW"),
            precision=lax.Precision.HIGHEST)
        return jax.nn.relu(y + b[None, :, None, None])

    x = conv(x, params["conv1_w"], params["conv1_b"])
    x = conv(x, params["conv2_w"], params["conv2_b"])
    x = conv(x, params["conv3_w"], params["conv3_b"])
    x = x.reshape(x.shape[0], -1)
    x = jax.nn.relu(
        jnp.dot(x, params["head1_w"].T, precision=lax.Precision.HIGHEST)
        + params["head1_b"])
    x = (jnp.dot(x, params["head2_w"].T, precision=lax.Precision.HIGHEST)
         + params["head2_b"])
    return x


if __name__ == "__main__":
    H = W = 16
    IN_CH = 3
    HIDDEN_FC = 128
    OUTPUTS = 2
    BATCH = 2

    key = jax.random.PRNGKey(0)
    pkey, xkey = jax.random.split(key)
    params = init_params(pkey, h=H, w=W, in_channels=IN_CH,
                         hidden_fc=HIDDEN_FC, outputs=OUTPUTS)
    arrays, cfg = prepare_params(params)     # weight prep hoisted out of fwd

    x = jax.random.normal(xkey, (BATCH, IN_CH, H, W), jnp.float32)

    fwd = jax.jit(lambda a, xx: net_forward(a, cfg, xx))
    out = jax.block_until_ready(fwd(arrays, x))
    assert out.shape == (BATCH, OUTPUTS), out.shape

    ref = jax.block_until_ready(jax.jit(reference_forward)(params, x))
    max_err = float(jnp.max(jnp.abs(out - ref)))
    assert jnp.allclose(out, ref, rtol=2e-2, atol=2e-2), f"max_err={max_err}"

    print("KERNEL_OK")
</pallas_src>

<mosaic_0001>
module attributes {stable_mosaic.version = 11 : i64} {
  func.func @_conv_mm_kernel(%arg0: i32, %arg1: memref<16x128xf32, #tpu.memory_space<vmem>>, %arg2: memref<128x512xf32, #tpu.memory_space<vmem>>, %arg3: memref<16x1xf32, #tpu.memory_space<vmem>>, %arg4: memref<16x512xf32, #tpu.memory_space<vmem>>) attributes {dimension_semantics = [#tpu.dimension_semantics<parallel>], iteration_bounds = array<i64: 1>, scalar_prefetch = 0 : i64, scratch_operands = 0 : i64, tpu.core_type = #tpu.core_type<tc>, window_params = [{pipeline_mode = #tpu.pipeline_mode<synchronous>, transform_indices = @transform_0, window_bounds = array<i64: 16, 128>}, {transform_indices = @transform_1, window_bounds = array<i64: 128, 512>}, {pipeline_mode = #tpu.pipeline_mode<synchronous>, transform_indices = @transform_2, window_bounds = array<i64: 16, 1>}, {transform_indices = @transform_3, window_bounds = array<i64: 16, 512>}]} {
    %c0 = arith.constant 0 : index
    %c0_0 = arith.constant 0 : index
    %0 = vector.load %arg1[%c0, %c0_0] : memref<16x128xf32, #tpu.memory_space<vmem>>, vector<16x128xf32>
    %c0_1 = arith.constant 0 : index
    %c0_2 = arith.constant 0 : index
    %1 = vector.load %arg2[%c0_1, %c0_2] : memref<128x512xf32, #tpu.memory_space<vmem>>, vector<128x512xf32>
    %cst = arith.constant dense<0.000000e+00> : vector<16x512xf32>
    %2 = tpu.matmul %0, %1, %cst {dimension_numbers = #tpu.dot_dimension_numbers<[1], [0], [0], [1], [0, 0, 1, 1], [], []>} : vector<16x128xf32>, vector<128x512xf32>, vector<16x512xf32> -> vector<16x512xf32>
    %c0_3 = arith.constant 0 : index
    %c0_4 = arith.constant 0 : index
    %3 = vector.load %arg3[%c0_3, %c0_4] : memref<16x1xf32, #tpu.memory_space<vmem>>, vector<16x1xf32>
    %4 = vector.broadcast %3 : vector<16x1xf32> to vector<16x512xf32>
    %5 = arith.addf %2, %4 : vector<16x512xf32>
    %cst_5 = arith.constant 0.000000e+00 : f32
    %6 = vector.broadcast %cst_5 : f32 to vector<16x512xf32>
    %7 = arith.maximumf %5, %6 : vector<16x512xf32>
    %c0_6 = arith.constant 0 : index
    %c0_7 = arith.constant 0 : index
    %8 = vector.load %arg4[%c0_6, %c0_7] : memref<16x512xf32, #tpu.memory_space<vmem>>, vector<16x512xf32>
    tpu.vector_store %arg4[%c0_6, %c0_7], %7 {strides = array<i32>} : memref<16x512xf32, #tpu.memory_space<vmem>>, vector<16x512xf32>,
    return
  }
  func.func @transform_0(%arg0: i32) -> (i32, i32) {
    %c0_i32 = arith.constant 0 : i32
    %c0_i32_0 = arith.constant 0 : i32
    %c0_i32_1 = arith.constant 0 : i32
    return %c0_i32, %c0_i32_0 : i32, i32
  }
  func.func @transform_1(%arg0: i32) -> (i32, i32) {
    %c0_i32 = arith.constant 0 : i32
    %c0_i32_0 = arith.constant 0 : i32
    return %c0_i32, %arg0 : i32, i32
  }
  func.func @transform_2(%arg0: i32) -> (i32, i32) {
    %c0_i32 = arith.constant 0 : i32
    %c0_i32_0 = arith.constant 0 : i32
    %c0_i32_1 = arith.constant 0 : i32
    return %c0_i32, %c0_i32_0 : i32, i32
  }
  func.func @transform_3(%arg0: i32) -> (i32, i32) {
    %c0_i32 = arith.constant 0 : i32
    %c0_i32_0 = arith.constant 0 : i32
    return %c0_i32, %arg0 : i32, i32
  }
}

module attributes {stable_mosaic.version = 11 : i64} {
  func.func @_conv_mm_kernel(%arg0: i32, %arg1: memref<32x256xf32, #tpu.memory_space<vmem>>, %arg2: memref<256x384xf32, #tpu.memory_space<vmem>>, %arg3: memref<32x1xf32, #tpu.memory_space<vmem>>, %arg4: memref<32x384xf32, #tpu.memory_space<vmem>>) attributes {dimension_semantics = [#tpu.dimension_semantics<parallel>], iteration_bounds = array<i64: 1>, scalar_prefetch = 0 : i64, scratch_operands = 0 : i64, tpu.core_type = #tpu.core_type<tc>, window_params = [{pipeline_mode = #tpu.pipeline_mode<synchronous>, transform_indices = @transform_0, window_bounds = array<i64: 32, 256>}, {transform_indices = @transform_1, window_bounds = array<i64: 256, 384>}, {pipeline_mode = #tpu.pipeline_mode<synchronous>, transform_indices = @transform_2, window_bounds = array<i64: 32, 1>}, {transform_indices = @transform_3, window_bounds = array<i64: 32, 384>}]} {
    %c0 = arith.constant 0 : index
    %c0_0 = arith.constant 0 : index
    %0 = vector.load %arg1[%c0, %c0_0] : memref<32x256xf32, #tpu.memory_space<vmem>>, vector<32x256xf32>
    %c0_1 = arith.constant 0 : index
    %c0_2 = arith.constant 0 : index
    %1 = vector.load %arg2[%c0_1, %c0_2] : memref<256x384xf32, #tpu.memory_space<vmem>>, vector<256x384xf32>
    %cst = arith.constant dense<0.000000e+00> : vector<32x384xf32>
    %2 = tpu.matmul %0, %1, %cst {dimension_numbers = #tpu.dot_dimension_numbers<[1], [0], [0], [1], [0, 0, 1, 1], [], []>} : vector<32x256xf32>, vector<256x384xf32>, vector<32x384xf32> -> vector<32x384xf32>
    %c0_3 = arith.constant 0 : index
    %c0_4 = arith.constant 0 : index
    %3 = vector.load %arg3[%c0_3, %c0_4] : memref<32x1xf32, #tpu.memory_space<vmem>>, vector<32x1xf32>
    %4 = vector.broadcast %3 : vector<32x1xf32> to vector<32x384xf32>
    %5 = arith.addf %2, %4 : vector<32x384xf32>
    %cst_5 = arith.constant 0.000000e+00 : f32
    %6 = vector.broadcast %cst_5 : f32 to vector<32x384xf32>
    %7 = arith.maximumf %5, %6 : vector<32x384xf32>
    %c0_6 = arith.constant 0 : index
    %c0_7 = arith.constant 0 : index
    %8 = vector.load %arg4[%c0_6, %c0_7] : memref<32x384xf32, #tpu.memory_space<vmem>>, vector<32x384xf32>
    tpu.vector_store %arg4[%c0_6, %c0_7], %7 {strides = array<i32>} : memref<32x384xf32, #tpu.memory_space<vmem>>, vector<32x384xf32>,
    return
  }
  func.func @transform_0(%arg0: i32) -> (i32, i32) {
    %c0_i32 = arith.constant 0 : i32
    %c0_i32_0 = arith.constant 0 : i32
    %c0_i32_1 = arith.constant 0 : i32
    return %c0_i32, %c0_i32_0 : i32, i32
  }
  func.func @transform_1(%arg0: i32) -> (i32, i32) {
    %c0_i32 = arith.constant 0 : i32
    %c0_i32_0 = arith.constant 0 : i32
    return %c0_i32, %arg0 : i32, i32
  }
  func.func @transform_2(%arg0: i32) -> (i32, i32) {
    %c0_i32 = arith.constant 0 : i32
    %c0_i32_0 = arith.constant 0 : i32
    %c0_i32_1 = arith.constant 0 : i32
    return %c0_i32, %c0_i32_0 : i32, i32
  }
  func.func @transform_3(%arg0: i32) -> (i32, i32) {
    %c0_i32 = arith.constant 0 : i32
    %c0_i32_0 = arith.constant 0 : i32
    return %c0_i32, %arg0 : i32, i32
  }
}

module attributes {stable_mosaic.version = 11 : i64} {
  func.func @_conv_mm_kernel(%arg0: i32, %arg1: memref<32x384xf32, #tpu.memory_space<vmem>>, %arg2: memref<384x256xf32, #tpu.memory_space<vmem>>, %arg3: memref<32x1xf32, #tpu.memory_space<vmem>>, %arg4: memref<32x256xf32, #tpu.memory_space<vmem>>) attributes {dimension_semantics = [#tpu.dimension_semantics<parallel>], iteration_bounds = array<i64: 1>, scalar_prefetch = 0 : i64, scratch_operands = 0 : i64, tpu.core_type = #tpu.core_type<tc>, window_params = [{pipeline_mode = #tpu.pipeline_mode<synchronous>, transform_indices = @transform_0, window_bounds = array<i64: 32, 384>}, {transform_indices = @transform_1, window_bounds = array<i64: 384, 256>}, {pipeline_mode = #tpu.pipeline_mode<synchronous>, transform_indices = @transform_2, window_bounds = array<i64: 32, 1>}, {transform_indices = @transform_3, window_bounds = array<i64: 32, 256>}]} {
    %c0 = arith.constant 0 : index
    %c0_0 = arith.constant 0 : index
    %0 = vector.load %arg1[%c0, %c0_0] : memref<32x384xf32, #tpu.memory_space<vmem>>, vector<32x384xf32>
    %c0_1 = arith.constant 0 : index
    %c0_2 = arith.constant 0 : index
    %1 = vector.load %arg2[%c0_1, %c0_2] : memref<384x256xf32, #tpu.memory_space<vmem>>, vector<384x256xf32>
    %cst = arith.constant dense<0.000000e+00> : vector<32x256xf32>
    %2 = tpu.matmul %0, %1, %cst {dimension_numbers = #tpu.dot_dimension_numbers<[1], [0], [0], [1], [0, 0, 1, 1], [], []>} : vector<32x384xf32>, vector<384x256xf32>, vector<32x256xf32> -> vector<32x256xf32>
    %c0_3 = arith.constant 0 : index
    %c0_4 = arith.constant 0 : index
    %3 = vector.load %arg3[%c0_3, %c0_4] : memref<32x1xf32, #tpu.memory_space<vmem>>, vector<32x1xf32>
    %4 = vector.broadcast %3 : vector<32x1xf32> to vector<32x256xf32>
    %5 = arith.addf %2, %4 : vector<32x256xf32>
    %cst_5 = arith.constant 0.000000e+00 : f32
    %6 = vector.broadcast %cst_5 : f32 to vector<32x256xf32>
    %7 = arith.maximumf %5, %6 : vector<32x256xf32>
    %c0_6 = arith.constant 0 : index
    %c0_7 = arith.constant 0 : index
    %8 = vector.load %arg4[%c0_6, %c0_7] : memref<32x256xf32, #tpu.memory_space<vmem>>, vector<32x256xf32>
    tpu.vector_store %arg4[%c0_6, %c0_7], %7 {strides = array<i32>} : memref<32x256xf32, #tpu.memory_space<vmem>>, vector<32x256xf32>,
    return
  }
  func.func @transform_0(%arg0: i32) -> (i32, i32) {
    %c0_i32 = arith.constant 0 : i32
    %c0_i32_0 = arith.constant 0 : i32
    %c0_i32_1 = arith.constant 0 : i32
    return %c0_i32, %c0_i32_0 : i32, i32
  }
  func.func @transform_1(%arg0: i32) -> (i32, i32) {
    %c0_i32 = arith.constant 0 : i32
    %c0_i32_0 = arith.constant 0 : i32
    return %c0_i32, %arg0 : i32, i32
  }
  func.func @transform_2(%arg0: i32) -> (i32, i32) {
    %c0_i32 = arith.constant 0 : i32
    %c0_i32_0 = arith.constant 0 : i32
    %c0_i32_1 = arith.constant 0 : i32
    return %c0_i32, %c0_i32_0 : i32, i32
  }
  func.func @transform_3(%arg0: i32) -> (i32, i32) {
    %c0_i32 = arith.constant 0 : i32
    %c0_i32_0 = arith.constant 0 : i32
    return %c0_i32, %arg0 : i32, i32
  }
}

module attributes {stable_mosaic.version = 11 : i64} {
  func.func @_head_kernel(%arg0: i32, %arg1: memref<8x3200xf32, #tpu.memory_space<vmem>>, %arg2: memref<3200x128xf32, #tpu.memory_space<vmem>>, %arg3: memref<1x128xf32, #tpu.memory_space<vmem>>, %arg4: memref<128x128xf32, #tpu.memory_space<vmem>>, %arg5: memref<1x128xf32, #tpu.memory_space<vmem>>, %arg6: memref<8x128xf32, #tpu.memory_space<vmem>>) attributes {dimension_semantics = [#tpu.dimension_semantics<arbitrary>], iteration_bounds = array<i64: 1>, scalar_prefetch = 0 : i64, scratch_operands = 0 : i64, tpu.core_type = #tpu.core_type<tc>, window_params = [{pipeline_mode = #tpu.pipeline_mode<synchronous>, transform_indices = @transform_0, window_bounds = array<i64: 8, 3200>}, {pipeline_mode = #tpu.pipeline_mode<synchronous>, transform_indices = @transform_1, window_bounds = array<i64: 3200, 128>}, {pipeline_mode = #tpu.pipeline_mode<synchronous>, transform_indices = @transform_2, window_bounds = array<i64: 1, 128>}, {pipeline_mode = #tpu.pipeline_mode<synchronous>, transform_indices = @transform_3, window_bounds = array<i64: 128, 128>}, {pipeline_mode = #tpu.pipeline_mode<synchronous>, transform_indices = @transform_4, window_bounds = array<i64: 1, 128>}, {pipeline_mode = #tpu.pipeline_mode<synchronous>, transform_indices = @transform_5, window_bounds = array<i64: 8, 128>}]} {
    %c0 = arith.constant 0 : index
    %c0_0 = arith.constant 0 : index
    %0 = vector.load %arg1[%c0, %c0_0] : memref<8x3200xf32, #tpu.memory_space<vmem>>, vector<8x3200xf32>
    %c0_1 = arith.constant 0 : index
    %c0_2 = arith.constant 0 : index
    %1 = vector.load %arg2[%c0_1, %c0_2] : memref<3200x128xf32, #tpu.memory_space<vmem>>, vector<3200x128xf32>
    %cst = arith.constant dense<0.000000e+00> : vector<8x128xf32>
    %2 = tpu.matmul %0, %1, %cst {dimension_numbers = #tpu.dot_dimension_numbers<[1], [0], [0], [1], [0, 0, 1, 1], [], []>} : vector<8x3200xf32>, vector<3200x128xf32>, vector<8x128xf32> -> vector<8x128xf32>
    %c0_3 = arith.constant 0 : index
    %c0_4 = arith.constant 0 : index
    %3 = vector.load %arg3[%c0_3, %c0_4] : memref<1x128xf32, #tpu.memory_space<vmem>>, vector<1x128xf32>
    %4 = vector.broadcast %3 : vector<1x128xf32> to vector<8x128xf32>
    %5 = arith.addf %2, %4 : vector<8x128xf32>
    %cst_5 = arith.constant 0.000000e+00 : f32
    %6 = vector.broadcast %cst_5 : f32 to vector<8x128xf32>
    %7 = arith.maximumf %5, %6 : vector<8x128xf32>
    %c0_6 = arith.constant 0 : index
    %c0_7 = arith.constant 0 : index
    %8 = vector.load %arg4[%c0_6, %c0_7] : memref<128x128xf32, #tpu.memory_space<vmem>>, vector<128x128xf32>
    %cst_8 = arith.constant dense<0.000000e+00> : vector<8x128xf32>
    %9 = tpu.matmul %7, %8, %cst_8 {dimension_numbers = #tpu.dot_dimension_numbers<[1], [0], [0], [1], [0, 0, 1, 1], [], []>} : vector<8x128xf32>, vector<128x128xf32>, vector<8x128xf32> -> vector<8x128xf32>
    %c0_9 = arith.constant 0 : index
    %c0_10 = arith.constant 0 : index
    %10 = vector.load %arg5[%c0_9, %c0_10] : memref<1x128xf32, #tpu.memory_space<vmem>>, vector<1x128xf32>
    %11 = vector.broadcast %10 : vector<1x128xf32> to vector<8x128xf32>
    %12 = arith.addf %9, %11 : vector<8x128xf32>
    %c0_11 = arith.constant 0 : index
    %c0_12 = arith.constant 0 : index
    %13 = vector.load %arg6[%c0_11, %c0_12] : memref<8x128xf32, #tpu.memory_space<vmem>>, vector<8x128xf32>
    tpu.vector_store %arg6[%c0_11, %c0_12], %12 {strides = array<i32>} : memref<8x128xf32, #tpu.memory_space<vmem>>, vector<8x128xf32>,
    return
  }
  func.func @transform_0(%arg0: i32) -> (i32, i32) {
    %c0_i32 = arith.constant 0 : i32
    %c0_i32_0 = arith.constant 0 : i32
    %c0_i32_1 = arith.constant 0 : i32
    return %c0_i32, %c0_i32_0 : i32, i32
  }
  func.func @transform_1(%arg0: i32) -> (i32, i32) {
    %c0_i32 = arith.constant 0 : i32
    %c0_i32_0 = arith.constant 0 : i32
    %c0_i32_1 = arith.constant 0 : i32
    return %c0_i32, %c0_i32_0 : i32, i32
  }
  func.func @transform_2(%arg0: i32) -> (i32, i32) {
    %c0_i32 = arith.constant 0 : i32
    %c0_i32_0 = arith.constant 0 : i32
    %c0_i32_1 = arith.constant 0 : i32
    return %c0_i32, %c0_i32_0 : i32, i32
  }
  func.func @transform_3(%arg0: i32) -> (i32, i32) {
    %c0_i32 = arith.constant 0 : i32
    %c0_i32_0 = arith.constant 0 : i32
    %c0_i32_1 = arith.constant 0 : i32
    return %c0_i32, %c0_i32_0 : i32, i32
  }
  func.func @transform_4(%arg0: i32) -> (i32, i32) {
    %c0_i32 = arith.constant 0 : i32
    %c0_i32_0 = arith.constant 0 : i32
    %c0_i32_1 = arith.constant 0 : i32
    return %c0_i32, %c0_i32_0 : i32, i32
  }
  func.func @transform_5(%arg0: i32) -> (i32, i32) {
    %c0_i32 = arith.constant 0 : i32
    %c0_i32_0 = arith.constant 0 : i32
    %c0_i32_1 = arith.constant 0 : i32
    return %c0_i32, %c0_i32_0 : i32, i32
  }
}

</mosaic_0001>

<bundles_post_ra>
// kernel: _lambda_.4
= control target key start
LH: loop header
LB: loop body
LE: loop exit
PB: predicated region body
PF: predicated region fallthrough
CT: control target
= control target key end

     0   :  { %v333_v3 = vmov 0.0   ;;  %v334_v8 = vmov 0   ;;  %s587_s1 = inlined_call_operand.vmem [shape: f32[128,512], index: 1, kind: input, shape index: {}]   ;;  %s588_s2 = inlined_call_operand.vmem [shape: f32[16,1], index: 2, kind: input, shape index: {}]   ;;  %s589_s0 = inlined_call_operand.vmem [shape: f32[16,128], index: 0, kind: input, shape index: {}]   ;;  %s590_s3 = inlined_call_operand.vmem [shape: f32[16,512], index: 3, kind: output, shape index: {}]  }
   0x1   :  { %v17_v0 = vld [vmem:[%s587_s1 + $0x8] sm:$0xff]  ;;  %v19_v2 = vld [vmem:[%s587_s1 + $0x18] sm:$0xff]  ;;  %156 = vmatprep.mubr.f32.mxu0 %v333_v3  ;;  %233 = vmatprep.mubr.f32.mxu1 %v333_v3  ;;  %v16_v6 = vld [vmem:[%s587_s1] sm:$0xff] }
   0x2   :  { %v21_v1 = vld [vmem:[%s587_s1 + $0x28] sm:$0xff]  ;;  %v23_v5 = vld [vmem:[%s587_s1 + $0x38] sm:$0xff]  ;;  %v20_v7 = vld [vmem:[%s587_s1 + $0x20] sm:$0xff]  ;;  %332 = vset.pattern.permute.xlu0 %v334_v8 }
   0x3   :  { %v266_v4 = vpack.c.bf16 %v21_v1, %v17_v0  ;;  %v298_v9 = vpack.c.bf16 %v23_v5, %v19_v2  ;;  %v268_v10 = vpack.c.bf16 %v20_v7, %v16_v6  ;;  %v18_v11 = vld [vmem:[%s587_s1 + $0x10] sm:$0xff]  ;;  %v25_v13 = vld [vmem:[%s587_s1 + $0x48] sm:$0xff]  ;;  %v27_v16 = vld [vmem:[%s587_s1 + $0x58] sm:$0xff] }
   0x4   :  { %v22_v12 = vld [vmem:[%s587_s1 + $0x30] sm:$0xff]  ;;  %v29_v15 = vld [vmem:[%s587_s1 + $0x68] sm:$0xff]  ;;  %v31_v17 = vld [vmem:[%s587_s1 + $0x78] sm:$0xff] }
   0x5   :  { %267 = vmatprep.subr.bf16.mxu0 %v266_v4  ;;  %v300_v14 = vpack.c.bf16 %v22_v12, %v18_v11  ;;  %299 = vmatprep.subr.bf16.mxu1 %v298_v9  ;;  %v270_v18 = vpack.c.bf16 %v29_v15, %v25_v13  ;;  %v302_v19 = vpack.c.bf16 %v31_v17, %v27_v16  ;;  %v24_v20 = vld [vmem:[%s587_s1 + $0x40] sm:$0xff]  ;;  %v26_v22 = vld [vmem:[%s587_s1 + $0x50] sm:$0xff]  ;;  %v33_v25 = vld [vmem:[%s587_s1 + $0x88] sm:$0xff] }
   0x6   :  { %269 = vmatpush1.bf16.msra.mxu0 %v268_v10  ;;  %v28_v21 = vld [vmem:[%s587_s1 + $0x60] sm:$0xff]  ;;  %v30_v24 = vld [vmem:[%s587_s1 + $0x70] sm:$0xff]  ;;  %v37_v26 = vld [vmem:[%s587_s1 + $0xa8] sm:$0xff] }
   0x7   :  { %301 = vmatpush1.bf16.msra.mxu1 %v300_v14  ;;  %v272_v23 = vpack.c.bf16 %v28_v21, %v24_v20  ;;  %271 = vmatprep.subr.bf16.mxu0 %v270_v18  ;;  %v304_v27 = vpack.c.bf16 %v30_v24, %v26_v22  ;;  %v274_v28 = vpack.c.bf16 %v37_v26, %v33_v25  ;;  %v35_v29 = vld [vmem:[%s587_s1 + $0x98] sm:$0xff]  ;;  %v32_v31 = vld [vmem:[%s587_s1 + $0x80] sm:$0xff]  ;;  %v34_v34 = vld [vmem:[%s587_s1 + $0x90] sm:$0xff] }
   0x8   :  { %303 = vmatprep.subr.bf16.mxu1 %v302_v19  ;;  %v39_v30 = vld [vmem:[%s587_s1 + $0xb8] sm:$0xff]  ;;  %v36_v33 = vld [vmem:[%s587_s1 + $0xa0] sm:$0xff]  ;;  %v38_v35 = vld [vmem:[%s587_s1 + $0xb0] sm:$0xff] }
   0x9   :  { %v306_v32 = vpack.c.bf16 %v39_v30, %v35_v29  ;;  %v276_v36 = vpack.c.bf16 %v36_v33, %v32_v31  ;;  %v41_v37 = vld [vmem:[%s587_s1 + $0xc8] sm:$0xff]  ;;  %v43_v39 = vld [vmem:[%s587_s1 + $0xd8] sm:$0xff]  ;;  %v308_v40 = vpack.c.bf16 %v38_v35, %v34_v34  ;;  %v40_v43 = vld [vmem:[%s587_s1 + $0xc0] sm:$0xff] }
   0xa   :  { %273 = vmatpush1.bf16.msra.mxu0 %v272_v23  ;;  %v45_v38 = vld [vmem:[%s587_s1 + $0xe8] sm:$0xff]  ;;  %v47_v42 = vld [vmem:[%s587_s1 + $0xf8] sm:$0xff]  ;;  %v44_v44 = vld [vmem:[%s587_s1 + $0xe0] sm:$0xff] }
   0xb   :  { %305 = vmatpush1.bf16.msra.mxu1 %v304_v27  ;;  %275 = vmatprep.subr.bf16.mxu0 %v274_v28  ;;  %v278_v41 = vpack.c.bf16 %v45_v38, %v41_v37  ;;  %v310_v45 = vpack.c.bf16 %v47_v42, %v43_v39  ;;  %v42_v46 = vld [vmem:[%s587_s1 + $0xd0] sm:$0xff]  ;;  %v49_v48 = vld [vmem:[%s587_s1 + $0x108] sm:$0xff]  ;;  %v51_v50 = vld [vmem:[%s587_s1 + $0x118] sm:$0xff]  ;;  %v280_v52 = vpack.c.bf16 %v44_v44, %v40_v43 }
   0xc   :  { %307 = vmatprep.subr.bf16.mxu1 %v306_v32  ;;  %v46_v47 = vld [vmem:[%s587_s1 + $0xf0] sm:$0xff]  ;;  %v53_v49 = vld [vmem:[%s587_s1 + $0x128] sm:$0xff]  ;;  %v55_v51 = vld [vmem:[%s587_s1 + $0x138] sm:$0xff] }
   0xd   :  { %v312_v53 = vpack.c.bf16 %v46_v47, %v42_v46  ;;  %v282_v54 = vpack.c.bf16 %v53_v49, %v49_v48  ;;  %v48_v55 = vld [vmem:[%s587_s1 + $0x100] sm:$0xff]  ;;  %v50_v57 = vld [vmem:[%s587_s1 + $0x110] sm:$0xff]  ;;  %v314_v58 = vpack.c.bf16 %v55_v51, %v51_v50  ;;  %v57_v60 = vld [vmem:[%s587_s1 + $0x148] sm:$0xff] }
   0xe   :  { %277 = vmatpush1.bf16.msra.mxu0 %v276_v36  ;;  %v52_v56 = vld [vmem:[%s587_s1 + $0x120] sm:$0xff]  ;;  %v54_v59 = vld [vmem:[%s587_s1 + $0x130] sm:$0xff]  ;;  %v61_v61 = vld [vmem:[%s587_s1 + $0x168] sm:$0xff] }
   0xf   :  { %309 = vmatpush1.bf16.msra.mxu1 %v308_v40  ;;  %279 = vmatprep.subr.bf16.mxu0 %v278_v41  ;;  %v59_v62 = vld [vmem:[%s587_s1 + $0x158] sm:$0xff]  ;;  %v284_v0 = vpack.c.bf16 %v52_v56, %v48_v55  ;;  %v316_v1 = vpack.c.bf16 %v54_v59, %v50_v57  ;;  %v286_v2 = vpack.c.bf16 %v61_v61, %v57_v60  ;;  %v56_v4 = vld [vmem:[%s587_s1 + $0x140] sm:$0xff]  ;;  %v58_v6 = vld [vmem:[%s587_s1 + $0x150] sm:$0xff] }
  0x10   :  { %311 = vmatprep.subr.bf16.mxu1 %v310_v45  ;;  %v63_v63 = vld [vmem:[%s587_s1 + $0x178] sm:$0xff]  ;;  %v60_v5 = vld [vmem:[%s587_s1 + $0x160] sm:$0xff]  ;;  %v62_v8 = vld [vmem:[%s587_s1 + $0x170] sm:$0xff] }
  0x11   :  { %v318_v7 = vpack.c.bf16 %v63_v63, %v59_v62  ;;  %v65_v9 = vld [vmem:[%s587_s1 + $0x188] sm:$0xff]  ;;  %v67_v11 = vld [vmem:[%s587_s1 + $0x198] sm:$0xff]  ;;  %v288_v13 = vpack.c.bf16 %v60_v5, %v56_v4  ;;  %v64_v14 = vld [vmem:[%s587_s1 + $0x180] sm:$0xff]  ;;  %v320_v15 = vpack.c.bf16 %v62_v8, %v58_v6 }
  0x12   :  { %281 = vmatpush1.bf16.msra.mxu0 %v280_v52  ;;  %v69_v10 = vld [vmem:[%s587_s1 + $0x1a8] sm:$0xff]  ;;  %v71_v12 = vld [vmem:[%s587_s1 + $0x1b8] sm:$0xff]  ;;  %v68_v17 = vld [vmem:[%s587_s1 + $0x1a0] sm:$0xff] }
  0x13   :  { %313 = vmatpush1.bf16.msra.mxu1 %v312_v53  ;;  %283 = vmatprep.subr.bf16.mxu0 %v282_v54  ;;  %v290_v16 = vpack.c.bf16 %v69_v10, %v65_v9  ;;  %v66_v18 = vld [vmem:[%s587_s1 + $0x190] sm:$0xff]  ;;  %v322_v20 = vpack.c.bf16 %v71_v12, %v67_v11  ;;  %v73_v21 = vld [vmem:[%s587_s1 + $0x1c8] sm:$0xff]  ;;  %v80_v23 = vld [vmem:[%s588_s2] sm:$0xff]  ;;  %v292_v26 = vpack.c.bf16 %v68_v17, %v64_v14 }
  0x14   :  { %315 = vmatprep.subr.bf16.mxu1 %v314_v58  ;;  %v70_v19 = vld [vmem:[%s587_s1 + $0x1b0] sm:$0xff]  ;;  %v77_v22 = vld [vmem:[%s587_s1 + $0x1e8] sm:$0xff]  ;;  %v75_v24 = vld [vmem:[%s587_s1 + $0x1d8] sm:$0xff]  ;;  %84 = vperm.xlu0 %332, %v80_v23  }
  0x15   :  { %v79_v25 = vld [vmem:[%s587_s1 + $0x1f8] sm:$0xff]  ;;  %v81_v27 = vld [vmem:[%s588_s2 + $0x8] sm:$0xff]  ;;  %v324_v28 = vpack.c.bf16 %v70_v19, %v66_v18  ;;  %v294_v29 = vpack.c.bf16 %v77_v22, %v73_v21  ;;  %v72_v30 = vld [vmem:[%s587_s1 + $0x1c0] sm:$0xff] }
  0x16   :  { %285 = vmatpush1.bf16.msra.mxu0 %v284_v0  ;;  %v76_v31 = vld [vmem:[%s587_s1 + $0x1e0] sm:$0xff]  ;;  %v326_v32 = vpack.c.bf16 %v79_v25, %v75_v24  ;;  %v74_v33 = vld [vmem:[%s587_s1 + $0x1d0] sm:$0xff]  ;;  %v15_v38 = vld [vmem:[%s589_s0 + $0x8] sm:$0xff] }
  0x17   :  { %317 = vmatpush1.bf16.msra.mxu1 %v316_v1  ;;  %287 = vmatprep.subr.bf16.mxu0 %v286_v2  ;;  %v78_v34 = vld [vmem:[%s587_s1 + $0x1f0] sm:$0xff]  ;;  %v296_v35 = vpack.c.bf16 %v76_v31, %v72_v30  ;;  %v14_v37 = vld [vmem:[%s589_s0] sm:$0xff] }
  0x18   :  { %319 = vmatprep.subr.bf16.mxu1 %v318_v7  ;;  %89 = vperm.xlu0 %332, %v81_v27   ;;  %v328_v36 = vpack.c.bf16 %v78_v34, %v74_v33 }
  0x1a   :  { %289 = vmatpush1.bf16.msra.mxu0 %v288_v13 }
  0x1b   :  { %321 = vmatpush1.bf16.msra.mxu1 %v320_v15  ;;  %291 = vmatprep.subr.bf16.mxu0 %v290_v16 }
  0x1c   :  { %323 = vmatprep.subr.bf16.mxu1 %v322_v20 }
  0x1e   :  { %293 = vmatpush1.bf16.msra.mxu0 %v292_v26 }
  0x1f   :  { %325 = vmatpush1.bf16.msra.mxu1 %v324_v28  ;;  %295 = vmatprep.subr.bf16.mxu0 %v294_v29 }
  0x20   :  { %327 = vmatprep.subr.bf16.mxu1 %v326_v32 }
  0x22   :  { %297 = vmatpush1.bf16.msra.mxu0 %v296_v35 }
  0x23   :  { %329 = vmatpush1.bf16.msra.mxu1 %v328_v36 }
  0x25   :  { %157 = vmatmul.mubr.f32.vlgmr.msra.gmra.mrb[0].mxu0 %v14_v37 }
  0x26   :  { %234 = vmatmul.mubr.f32.vlgmr.msra.gmra.mrb[0].mxu1 %v14_v37  ;;  %162 = vmatprep.mubr.f32.mxu0 %v333_v3 }
  0x27   :  { %239 = vmatprep.mubr.f32.mxu1 %v333_v3 }
  0x29   :  { %163 = vmatmul.mubr.f32.gmra.mrb[2].mxu0 %v15_v38 }
  0x2a   :  { %240 = vmatmul.mubr.f32.gmra.mrb[2].mxu1 %v15_v38 }
  0x93   :  { %v85_v39 = vpop.permute.xlu0 %84 }
  0x97   :  { %v90_v50 = vpop.permute.xlu0 %89 }
  0xf8   :  { %v158_v40 = vpop.f32.mrb[0].mxu0 }
  0xf9   :  { %v159_v41 = vadd.f32 %v158_v40, %v85_v39  ;;  %v235_v42 = vpop.f32.mrb[0].mxu1  ;;  %v160_v43 = vpop.f32.mrb[1].mxu0 }
  0xfa   :  { %v236_v44 = vadd.f32 %v235_v42, %v85_v39  ;;  %v161_v45 = vadd.f32 %v160_v43, %v85_v39  ;;  %v237_v46 = vpop.f32.mrb[1].mxu1 }
  0xfb   :  { %v246_v47 = vmax.f32 %v159_v41, 0.0  ;;  %v238_v48 = vadd.f32 %v237_v46, %v85_v39 }
  0xfc   :  { %v248_v49 = vmax.f32 %v236_v44, 0.0  ;;  %v247_v51 = vmax.f32 %v161_v45, 0.0  ;;  %v164_v52 = vpop.f32.mrb[2].mxu0 }
  0xfd   :  { %254 = vst [vmem:[%s590_s3] sm:$0xff] %v246_v47  ;;  %v249_v3 = vmax.f32 %v238_v48, 0.0  ;;  %v165_v53 = vadd.f32 %v164_v52, %v90_v50  ;;  %v241_v54 = vpop.f32.mrb[2].mxu1  ;;  %v166_v55 = vpop.f32.mrb[3].mxu0 }
  0xfe   :  { %256 = vst [vmem:[%s590_s3 + $0x10] sm:$0xff] %v248_v49  ;;  %255 = vst [vmem:[%s590_s3 + $0x8] sm:$0xff] %v247_v51  ;;  %v242_v56 = vadd.f32 %v241_v54, %v90_v50  ;;  %v167_v57 = vadd.f32 %v166_v55, %v90_v50  ;;  %v243_v58 = vpop.f32.mrb[3].mxu1 }
  0xff   :  { %257 = vst [vmem:[%s590_s3 + $0x18] sm:$0xff] %v249_v3  ;;  %v250_v59 = vmax.f32 %v165_v53, 0.0  ;;  %v244_v60 = vadd.f32 %v243_v58, %v90_v50 }
 0x100   :  { %v252_v61 = vmax.f32 %v242_v56, 0.0  ;;  %v251_v62 = vmax.f32 %v167_v57, 0.0 }
 0x101   :  { %258 = vst [vmem:[%s590_s3 + $0x20] sm:$0xff] %v250_v59  ;;  %v253_v63 = vmax.f32 %v244_v60, 0.0 }
 0x102   :  { %260 = vst [vmem:[%s590_s3 + $0x30] sm:$0xff] %v252_v61  ;;  %259 = vst [vmem:[%s590_s3 + $0x28] sm:$0xff] %v251_v62 }
 0x103   :  { %261 = vst [vmem:[%s590_s3 + $0x38] sm:$0xff] %v253_v63 }

// kernel: _lambda_.5
= control target key start
LH: loop header
LB: loop body
LE: loop exit
PB: predicated region body
PF: predicated region fallthrough
CT: control target
= control target key end

     0   :  { %v487_v3 = vmov 0   ;;  %s868_s1 = inlined_call_operand.vmem [shape: f32[256,384], index: 1, kind: input, shape index: {}]   ;;  %s869_s0 = inlined_call_operand.vmem [shape: f32[32,256], index: 0, kind: input, shape index: {}]   ;;  %s870_s2 = inlined_call_operand.vmem [shape: f32[32,1], index: 2, kind: input, shape index: {}]   ;;  %s871_s3 = inlined_call_operand.vmem [shape: f32[32,384], index: 3, kind: output, shape index: {}]  }
   0x1   :  { %v23_v0 = vld [vmem:[%s868_s1 + $0x8] sm:$0xff]  ;;  %v26_v1 = vld [vmem:[%s868_s1 + $0x20] sm:$0xff]  ;;  %485 = vset.pattern.permute.xlu0 %v487_v3  ;;  %486 = vset.pattern.permute.xlu1 %v487_v3  ;;  %v25_v5 = vld [vmem:[%s868_s1 + $0x18] sm:$0xff] }
   0x2   :  { %v22_v2 = vld [vmem:[%s868_s1] sm:$0xff]  ;;  %v388_v4 = vpack.c.bf16 %v26_v1, %v23_v0  ;;  %v29_v6 = vld [vmem:[%s868_s1 + $0x38] sm:$0xff]  ;;  %v32_v7 = vld [vmem:[%s868_s1 + $0x50] sm:$0xff] }
   0x3   :  { %v390_v8 = vpack.c.bf16 %v25_v5, %v22_v2  ;;  %v392_v9 = vpack.c.bf16 %v32_v7, %v29_v6  ;;  %v28_v10 = vld [vmem:[%s868_s1 + $0x30] sm:$0xff]  ;;  %v31_v11 = vld [vmem:[%s868_s1 + $0x48] sm:$0xff]  ;;  %v38_v13 = vld [vmem:[%s868_s1 + $0x80] sm:$0xff] }
   0x4   :  { %v35_v12 = vld [vmem:[%s868_s1 + $0x68] sm:$0xff]  ;;  %389 = vmatprep.subr.bf16.mxu0 %v388_v4  ;;  %v394_v14 = vpack.c.bf16 %v31_v11, %v28_v10  ;;  %v34_v16 = vld [vmem:[%s868_s1 + $0x60] sm:$0xff]  ;;  %v37_v17 = vld [vmem:[%s868_s1 + $0x78] sm:$0xff] }
   0x5   :  { %391 = vmatpush1.bf16.msra.mxu0 %v390_v8  ;;  %v396_v15 = vpack.c.bf16 %v38_v13, %v35_v12  ;;  %v41_v18 = vld [vmem:[%s868_s1 + $0x98] sm:$0xff]  ;;  %v44_v19 = vld [vmem:[%s868_s1 + $0xb0] sm:$0xff]  ;;  %v398_v20 = vpack.c.bf16 %v37_v17, %v34_v16  ;;  %v43_v22 = vld [vmem:[%s868_s1 + $0xa8] sm:$0xff] }
   0x6   :  { %393 = vmatprep.subr.bf16.mxu0 %v392_v9  ;;  %v40_v21 = vld [vmem:[%s868_s1 + $0x90] sm:$0xff]  ;;  %v400_v23 = vpack.c.bf16 %v44_v19, %v41_v18  ;;  %v47_v24 = vld [vmem:[%s868_s1 + $0xc8] sm:$0xff]  ;;  %v50_v27 = vld [vmem:[%s868_s1 + $0xe0] sm:$0xff] }
   0x7   :  { %v72_v25 = vld [vmem:[%s868_s1 + $0x190] sm:$0xff]  ;;  %v75_v26 = vld [vmem:[%s868_s1 + $0x1a8] sm:$0xff]  ;;  %v402_v32 = vpack.c.bf16 %v43_v22, %v40_v21  ;;  %v78_v33 = vld [vmem:[%s868_s1 + $0x1c0] sm:$0xff]  ;;  %v404_v36 = vpack.c.bf16 %v50_v27, %v47_v24 }
   0x8   :  { %v452_v28 = vpack.c.bf16 %v75_v26, %v72_v25  ;;  %v24_v29 = vld [vmem:[%s868_s1 + $0x10] sm:$0xff]  ;;  %v27_v30 = vld [vmem:[%s868_s1 + $0x28] sm:$0xff]  ;;  %v81_v34 = vld [vmem:[%s868_s1 + $0x1d8] sm:$0xff] }
   0x9   :  { %395 = vmatpush1.bf16.msra.mxu0 %v394_v14  ;;  %v454_v31 = vpack.c.bf16 %v27_v30, %v24_v29  ;;  %v30_v35 = vld [vmem:[%s868_s1 + $0x40] sm:$0xff]  ;;  %v49_v38 = vld [vmem:[%s868_s1 + $0xd8] sm:$0xff]  ;;  %v456_v39 = vpack.c.bf16 %v81_v34, %v78_v33  ;;  %v56_v42 = vld [vmem:[%s868_s1 + $0x110] sm:$0xff] }
   0xa   :  { %397 = vmatprep.subr.bf16.mxu0 %v396_v15  ;;  %453 = vmatprep.subr.bf16.mxu1 %v452_v28  ;;  %v46_v37 = vld [vmem:[%s868_s1 + $0xc0] sm:$0xff]  ;;  %v33_v40 = vld [vmem:[%s868_s1 + $0x58] sm:$0xff]  ;;  %v84_v44 = vld [vmem:[%s868_s1 + $0x1f0] sm:$0xff] }
   0xb   :  { %455 = vmatpush3.bf16.msra.mxu1 %v454_v31  ;;  %v53_v41 = vld [vmem:[%s868_s1 + $0xf8] sm:$0xff]  ;;  %v458_v43 = vpack.c.bf16 %v33_v40, %v30_v35  ;;  %v87_v45 = vld [vmem:[%s868_s1 + $0x208] sm:$0xff]  ;;  %v36_v46 = vld [vmem:[%s868_s1 + $0x70] sm:$0xff]  ;;  %v406_v48 = vpack.c.bf16 %v49_v38, %v46_v37 }
   0xc   :  { %457 = vmatprep.subr.bf16.mxu1 %v456_v39  ;;  %v39_v47 = vld [vmem:[%s868_s1 + $0x88] sm:$0xff]  ;;  %v52_v49 = vld [vmem:[%s868_s1 + $0xf0] sm:$0xff]  ;;  %v460_v51 = vpack.c.bf16 %v87_v45, %v84_v44  ;;  %v408_v52 = vpack.c.bf16 %v56_v42, %v53_v41  ;;  %v90_v55 = vld [vmem:[%s868_s1 + $0x220] sm:$0xff] }
   0xd   :  { %399 = vmatpush1.bf16.msra.mxu0 %v398_v20  ;;  %v55_v50 = vld [vmem:[%s868_s1 + $0x108] sm:$0xff]  ;;  %v462_v54 = vpack.c.bf16 %v39_v47, %v36_v46  ;;  %v93_v56 = vld [vmem:[%s868_s1 + $0x238] sm:$0xff]  ;;  %v62_v57 = vld [vmem:[%s868_s1 + $0x140] sm:$0xff] }
   0xe   :  { %401 = vmatprep.subr.bf16.mxu0 %v400_v23  ;;  %v59_v53 = vld [vmem:[%s868_s1 + $0x128] sm:$0xff]  ;;  %v464_v58 = vpack.c.bf16 %v93_v56, %v90_v55  ;;  %v42_v59 = vld [vmem:[%s868_s1 + $0xa0] sm:$0xff]  ;;  %v45_v60 = vld [vmem:[%s868_s1 + $0xb8] sm:$0xff]  ;;  %v410_v61 = vpack.c.bf16 %v55_v50, %v52_v49 }
   0xf   :  { %459 = vmatpush3.bf16.msra.mxu1 %v458_v43  ;;  %v96_v62 = vld [vmem:[%s868_s1 + $0x250] sm:$0xff]  ;;  %v99_v63 = vld [vmem:[%s868_s1 + $0x268] sm:$0xff]  ;;  %v412_v0 = vpack.c.bf16 %v62_v57, %v59_v53  ;;  %v58_v1 = vld [vmem:[%s868_s1 + $0x120] sm:$0xff]  ;;  %v466_v4 = vpack.c.bf16 %v45_v60, %v42_v59 }
  0x10   :  { %461 = vmatprep.subr.bf16.mxu1 %v460_v51  ;;  %v61_v2 = vld [vmem:[%s868_s1 + $0x138] sm:$0xff]  ;;  %v68_v5 = vld [vmem:[%s868_s1 + $0x170] sm:$0xff]  ;;  %v468_v6 = vpack.c.bf16 %v99_v63, %v96_v62  ;;  %v51_v8 = vld [vmem:[%s868_s1 + $0xe8] sm:$0xff] }
  0x11   :  { %403 = vmatpush1.bf16.msra.mxu0 %v402_v32  ;;  %v65_v3 = vld [vmem:[%s868_s1 + $0x158] sm:$0xff]  ;;  %v48_v7 = vld [vmem:[%s868_s1 + $0xd0] sm:$0xff]  ;;  %v102_v9 = vld [vmem:[%s868_s1 + $0x280] sm:$0xff]  ;;  %v414_v11 = vpack.c.bf16 %v61_v2, %v58_v1 }
  0x12   :  { %405 = vmatprep.subr.bf16.mxu0 %v404_v36  ;;  %v105_v10 = vld [vmem:[%s868_s1 + $0x298] sm:$0xff]  ;;  %v416_v12 = vpack.c.bf16 %v68_v5, %v65_v3  ;;  %v64_v13 = vld [vmem:[%s868_s1 + $0x150] sm:$0xff]  ;;  %v67_v14 = vld [vmem:[%s868_s1 + $0x168] sm:$0xff]  ;;  %v470_v16 = vpack.c.bf16 %v51_v8, %v48_v7 }
  0x13   :  { %463 = vmatpush3.bf16.msra.mxu1 %v462_v54  ;;  %v71_v15 = vld [vmem:[%s868_s1 + $0x188] sm:$0xff]  ;;  %v74_v17 = vld [vmem:[%s868_s1 + $0x1a0] sm:$0xff]  ;;  %v472_v18 = vpack.c.bf16 %v105_v10, %v102_v9  ;;  %v57_v20 = vld [vmem:[%s868_s1 + $0x118] sm:$0xff]  ;;  %v418_v23 = vpack.c.bf16 %v67_v14, %v64_v13 }
  0x14   :  { %465 = vmatprep.subr.bf16.mxu1 %v464_v58  ;;  %v54_v19 = vld [vmem:[%s868_s1 + $0x100] sm:$0xff]  ;;  %v108_v21 = vld [vmem:[%s868_s1 + $0x2b0] sm:$0xff]  ;;  %v111_v22 = vld [vmem:[%s868_s1 + $0x2c8] sm:$0xff]  ;;  %v420_v25 = vpack.c.bf16 %v74_v17, %v71_v15 }
  0x15   :  { %407 = vmatpush1.bf16.msra.mxu0 %v406_v48  ;;  %v70_v24 = vld [vmem:[%s868_s1 + $0x180] sm:$0xff]  ;;  %v73_v26 = vld [vmem:[%s868_s1 + $0x198] sm:$0xff]  ;;  %v80_v28 = vld [vmem:[%s868_s1 + $0x1d0] sm:$0xff]  ;;  %v474_v29 = vpack.c.bf16 %v57_v20, %v54_v19  ;;  %v476_v30 = vpack.c.bf16 %v111_v22, %v108_v21 }
  0x16   :  { %409 = vmatprep.subr.bf16.mxu0 %v408_v52  ;;  %v77_v27 = vld [vmem:[%s868_s1 + $0x1b8] sm:$0xff]  ;;  %v60_v31 = vld [vmem:[%s868_s1 + $0x130] sm:$0xff]  ;;  %v63_v32 = vld [vmem:[%s868_s1 + $0x148] sm:$0xff]  ;;  %v422_v36 = vpack.c.bf16 %v73_v26, %v70_v24 }
  0x17   :  { %467 = vmatpush3.bf16.msra.mxu1 %v466_v4  ;;  %v15_v33 = vld [vmem:[%s869_s0 + $0x8] sm:$0xff]  ;;  %v114_v34 = vld [vmem:[%s868_s1 + $0x2e0] sm:$0xff]  ;;  %v117_v35 = vld [vmem:[%s868_s1 + $0x2f8] sm:$0xff]  ;;  %v424_v38 = vpack.c.bf16 %v80_v28, %v77_v27  ;;  %v478_v42 = vpack.c.bf16 %v63_v32, %v60_v31 }
  0x18   :  { %469 = vmatprep.subr.bf16.mxu1 %v468_v6  ;;  %295 = vmatprep.mubr.f32.mxu1 %v15_v33  ;;  %v76_v37 = vld [vmem:[%s868_s1 + $0x1b0] sm:$0xff]  ;;  %v79_v39 = vld [vmem:[%s868_s1 + $0x1c8] sm:$0xff]  ;;  %v86_v41 = vld [vmem:[%s868_s1 + $0x200] sm:$0xff]  ;;  %v480_v43 = vpack.c.bf16 %v117_v35, %v114_v34 }
  0x19   :  { %411 = vmatpush1.bf16.msra.mxu0 %v410_v61  ;;  %206 = vmatprep.mubr.f32.mxu0 %v15_v33  ;;  %v83_v40 = vld [vmem:[%s868_s1 + $0x1e8] sm:$0xff]  ;;  %v66_v44 = vld [vmem:[%s868_s1 + $0x160] sm:$0xff]  ;;  %v69_v45 = vld [vmem:[%s868_s1 + $0x178] sm:$0xff]  ;;  %v426_v48 = vpack.c.bf16 %v79_v39, %v76_v37 }
  0x1a   :  { %413 = vmatprep.subr.bf16.mxu0 %v412_v0  ;;  %v118_v46 = vld [vmem:[%s870_s2] sm:$0xff]  ;;  %v120_v47 = vld [vmem:[%s870_s2 + $0x10] sm:$0xff]  ;;  %v119_v49 = vld [vmem:[%s870_s2 + $0x8] sm:$0xff]  ;;  %v428_v50 = vpack.c.bf16 %v86_v41, %v83_v40  ;;  %v482_v53 = vpack.c.bf16 %v69_v45, %v66_v44 }
  0x1b   :  { %471 = vmatpush3.bf16.msra.mxu1 %v470_v16  ;;  %124 = vperm.xlu0 %485, %v118_v46   ;;  %v82_v51 = vld [vmem:[%s868_s1 + $0x1e0] sm:$0xff]  ;;  %v85_v52 = vld [vmem:[%s868_s1 + $0x1f8] sm:$0xff]  ;;  %v92_v56 = vld [vmem:[%s868_s1 + $0x230] sm:$0xff] }
  0x1c   :  { %473 = vmatprep.subr.bf16.mxu1 %v472_v18  ;;  %134 = vperm.xlu1 %486, %v120_v47   ;;  %v121_v54 = vld [vmem:[%s870_s2 + $0x18] sm:$0xff]  ;;  %v430_v57 = vpack.c.bf16 %v85_v52, %v82_v51  ;;  %v88_v59 = vld [vmem:[%s868_s1 + $0x210] sm:$0xff]  ;;  %v91_v60 = vld [vmem:[%s868_s1 + $0x228] sm:$0xff] }
  0x1d   :  { %415 = vmatpush1.bf16.msra.mxu0 %v414_v11  ;;  %v89_v55 = vld [vmem:[%s868_s1 + $0x218] sm:$0xff]  ;;  %v14_v61 = vld [vmem:[%s869_s0] sm:$0xff]  ;;  %v95_v62 = vld [vmem:[%s868_s1 + $0x248] sm:$0xff]  ;;  %v434_v1 = vpack.c.bf16 %v91_v60, %v88_v59 }
  0x1e   :  { %417 = vmatprep.subr.bf16.mxu0 %v416_v12  ;;  %v432_v58 = vpack.c.bf16 %v92_v56, %v89_v55  ;;  %v98_v63 = vld [vmem:[%s868_s1 + $0x260] sm:$0xff]  ;;  %v17_v0 = vld [vmem:[%s869_s0 + $0x18] sm:$0xff]  ;;  %v16_v5 = vld [vmem:[%s869_s0 + $0x10] sm:$0xff] }
  0x1f   :  { %475 = vmatpush3.bf16.msra.mxu1 %v474_v29  ;;  %129 = vperm.xlu0 %485, %v119_v49   ;;  %v436_v2 = vpack.c.bf16 %v98_v63, %v95_v62  ;;  %v94_v3 = vld [vmem:[%s868_s1 + $0x240] sm:$0xff]  ;;  %v97_v4 = vld [vmem:[%s868_s1 + $0x258] sm:$0xff]  ;;  %v104_v7 = vld [vmem:[%s868_s1 + $0x290] sm:$0xff] }
  0x20   :  { %477 = vmatprep.subr.bf16.mxu1 %v476_v30  ;;  %139 = vperm.xlu1 %486, %v121_v54   ;;  %v101_v6 = vld [vmem:[%s868_s1 + $0x278] sm:$0xff]  ;;  %v19_v8 = vld [vmem:[%s869_s0 + $0x28] sm:$0xff]  ;;  %v438_v9 = vpack.c.bf16 %v97_v4, %v94_v3  ;;  %v100_v11 = vld [vmem:[%s868_s1 + $0x270] sm:$0xff] }
  0x21   :  { %419 = vmatpush1.bf16.msra.mxu0 %v418_v23  ;;  %v440_v10 = vpack.c.bf16 %v104_v7, %v101_v6  ;;  %v103_v12 = vld [vmem:[%s868_s1 + $0x288] sm:$0xff]  ;;  %v18_v13 = vld [vmem:[%s869_s0 + $0x20] sm:$0xff]  ;;  %v21_v16 = vld [vmem:[%s869_s0 + $0x38] sm:$0xff] }
  0x22   :  { %421 = vmatprep.subr.bf16.mxu0 %v420_v25  ;;  %v107_v14 = vld [vmem:[%s868_s1 + $0x2a8] sm:$0xff]  ;;  %v110_v15 = vld [vmem:[%s868_s1 + $0x2c0] sm:$0xff]  ;;  %v442_v17 = vpack.c.bf16 %v103_v12, %v100_v11  ;;  %v109_v20 = vld [vmem:[%s868_s1 + $0x2b8] sm:$0xff] }
  0x23   :  { %479 = vmatpush3.bf16.msra.mxu1 %v478_v42  ;;  %v444_v18 = vpack.c.bf16 %v110_v15, %v107_v14  ;;  %v106_v19 = vld [vmem:[%s868_s1 + $0x2a0] sm:$0xff]  ;;  %v20_v21 = vld [vmem:[%s869_s0 + $0x30] sm:$0xff]  ;;  %v113_v22 = vld [vmem:[%s868_s1 + $0x2d8] sm:$0xff] }
  0x24   :  { %481 = vmatprep.subr.bf16.mxu1 %v480_v43  ;;  %v116_v23 = vld [vmem:[%s868_s1 + $0x2f0] sm:$0xff]  ;;  %v446_v24 = vpack.c.bf16 %v109_v20, %v106_v19  ;;  %v115_v27 = vld [vmem:[%s868_s1 + $0x2e8] sm:$0xff] }
  0x25   :  { %423 = vmatpush1.bf16.msra.mxu0 %v422_v36  ;;  %v448_v25 = vpack.c.bf16 %v116_v23, %v113_v22  ;;  %v112_v26 = vld [vmem:[%s868_s1 + $0x2d0] sm:$0xff] }
  0x26   :  { %425 = vmatprep.subr.bf16.mxu0 %v424_v38  ;;  %v450_v28 = vpack.c.bf16 %v115_v27, %v112_v26 }
  0x27   :  { %483 = vmatpush3.bf16.msra.mxu1 %v482_v53 }
  0x29   :  { %427 = vmatpush1.bf16.msra.mxu0 %v426_v48 }
  0x2a   :  { %429 = vmatprep.subr.bf16.mxu0 %v428_v50  ;;  %296 = vmatmul.mubr.f32.vlgmr.msra.gmra.mrb[0].mxu1 %v14_v61 }
  0x2b   :  { %300 = vmatprep.mubr.f32.mxu1 %v17_v0 }
  0x2d   :  { %431 = vmatpush1.bf16.msra.mxu0 %v430_v57 }
  0x2e   :  { %433 = vmatprep.subr.bf16.mxu0 %v432_v58  ;;  %301 = vmatmul.mubr.f32.gmra.mrb[2].mxu1 %v16_v5 }
  0x2f   :  { %305 = vmatprep.mubr.f32.mxu1 %v19_v8 }
  0x31   :  { %435 = vmatpush1.bf16.msra.mxu0 %v434_v1 }
  0x32   :  { %437 = vmatprep.subr.bf16.mxu0 %v436_v2  ;;  %306 = vmatmul.mubr.f32.gmra.mrb[4].mxu1 %v18_v13 }
  0x33   :  { %310 = vmatprep.mubr.f32.mxu1 %v21_v16 }
  0x35   :  { %439 = vmatpush1.bf16.msra.mxu0 %v438_v9 }
  0x36   :  { %441 = vmatprep.subr.bf16.mxu0 %v440_v10  ;;  %311 = vmatmul.mubr.f32.gmra.mrb[6].mxu1 %v20_v21 }
  0x39   :  { %443 = vmatpush1.bf16.msra.mxu0 %v442_v17 }
  0x3a   :  { %445 = vmatprep.subr.bf16.mxu0 %v444_v18 }
  0x3d   :  { %447 = vmatpush1.bf16.msra.mxu0 %v446_v24 }
  0x3e   :  { %449 = vmatprep.subr.bf16.mxu0 %v448_v25 }
  0x41   :  { %451 = vmatpush1.bf16.msra.mxu0 %v450_v28 }
  0x44   :  { %207 = vmatmul.mubr.f32.vlgmr.msra.gmra.mrb[0].mxu0 %v14_v61 }
  0x45   :  { %212 = vmatprep.mubr.f32.mxu0 %v17_v0 }
  0x48   :  { %213 = vmatmul.mubr.f32.gmra.mrb[2].mxu0 %v16_v5 }
  0x49   :  { %218 = vmatprep.mubr.f32.mxu0 %v19_v8 }
  0x4c   :  { %219 = vmatmul.mubr.f32.gmra.mrb[4].mxu0 %v18_v13 }
  0x4d   :  { %224 = vmatprep.mubr.f32.mxu0 %v21_v16 }
  0x50   :  { %225 = vmatmul.mubr.f32.gmra.mrb[6].mxu0 %v20_v21 }
  0x9a   :  { %v125_v29 = vpop.permute.xlu0 %124 }
  0x9b   :  { %v135_v39 = vpop.permute.xlu1 %134 }
  0x9e   :  { %v130_v36 = vpop.permute.xlu0 %129 }
  0x9f   :  { %v140_v48 = vpop.permute.xlu1 %139 }
  0xfd   :  { %v376_v30 = vpop.f32.mrb[0].mxu1 }
  0xfe   :  { %v377_v31 = vpop.f32.mrb[1].mxu1 }
  0xff   :  { %v378_v32 = vadd.f32 %v377_v31, %v376_v30 }
 0x101   :  { %v298_v33 = vadd.f32 %v378_v32, %v125_v29  ;;  %v379_v34 = vpop.f32.mrb[2].mxu1 }
 0x102   :  { %v380_v35 = vpop.f32.mrb[3].mxu1 }
 0x103   :  { %v318_v37 = vmax.f32 %v298_v33, 0.0  ;;  %v381_v38 = vadd.f32 %v380_v35, %v379_v34 }
 0x105   :  { %330 = vst [vmem:[%s871_s3 + $0x10] sm:$0xff] %v318_v37  ;;  %v303_v40 = vadd.f32 %v381_v38, %v130_v36  ;;  %v382_v41 = vpop.f32.mrb[4].mxu1 }
 0x106   :  { %v383_v42 = vpop.f32.mrb[5].mxu1 }
 0x107   :  { %v321_v43 = vmax.f32 %v303_v40, 0.0  ;;  %v384_v44 = vadd.f32 %v383_v42, %v382_v41 }
 0x109   :  { %333 = vst [vmem:[%s871_s3 + $0x28] sm:$0xff] %v321_v43  ;;  %v308_v45 = vadd.f32 %v384_v44, %v135_v39  ;;  %v385_v46 = vpop.f32.mrb[6].mxu1 }
 0x10a   :  { %v386_v47 = vpop.f32.mrb[7].mxu1 }
 0x10b   :  { %v324_v49 = vmax.f32 %v308_v45, 0.0  ;;  %v387_v50 = vadd.f32 %v386_v47, %v385_v46 }
 0x10d   :  { %336 = vst [vmem:[%s871_s3 + $0x40] sm:$0xff] %v324_v49  ;;  %v313_v51 = vadd.f32 %v387_v50, %v140_v48 }
 0x10f   :  { %v327_v52 = vmax.f32 %v313_v51, 0.0 }
 0x111   :  { %339 = vst [vmem:[%s871_s3 + $0x58] sm:$0xff] %v327_v52 }
 0x117   :  { %v208_v53 = vpop.f32.mrb[0].mxu0 }
 0x118   :  { %v209_v54 = vadd.f32 %v208_v53, %v125_v29  ;;  %v210_v55 = vpop.f32.mrb[1].mxu0 }
 0x119   :  { %v211_v56 = vadd.f32 %v210_v55, %v125_v29 }
 0x11a   :  { %v316_v57 = vmax.f32 %v209_v54, 0.0 }
 0x11b   :  { %v317_v58 = vmax.f32 %v211_v56, 0.0  ;;  %v214_v59 = vpop.f32.mrb[2].mxu0 }
 0x11c   :  { %328 = vst [vmem:[%s871_s3] sm:$0xff] %v316_v57  ;;  %v215_v60 = vadd.f32 %v214_v59, %v130_v36  ;;  %v216_v61 = vpop.f32.mrb[3].mxu0 }
 0x11d   :  { %329 = vst [vmem:[%s871_s3 + $0x8] sm:$0xff] %v317_v58  ;;  %v217_v62 = vadd.f32 %v216_v61, %v130_v36 }
 0x11e   :  { %v319_v63 = vmax.f32 %v215_v60, 0.0 }
 0x11f   :  { %v320_v0 = vmax.f32 %v217_v62, 0.0  ;;  %v220_v1 = vpop.f32.mrb[4].mxu0 }
 0x120   :  { %331 = vst [vmem:[%s871_s3 + $0x18] sm:$0xff] %v319_v63  ;;  %v221_v2 = vadd.f32 %v220_v1, %v135_v39  ;;  %v222_v3 = vpop.f32.mrb[5].mxu0 }
 0x121   :  { %332 = vst [vmem:[%s871_s3 + $0x20] sm:$0xff] %v320_v0  ;;  %v223_v4 = vadd.f32 %v222_v3, %v135_v39 }
 0x122   :  { %v322_v5 = vmax.f32 %v221_v2, 0.0 }
 0x123   :  { %v323_v6 = vmax.f32 %v223_v4, 0.0  ;;  %v226_v7 = vpop.f32.mrb[6].mxu0 }
 0x124   :  { %334 = vst [vmem:[%s871_s3 + $0x30] sm:$0xff] %v322_v5  ;;  %v227_v8 = vadd.f32 %v226_v7, %v140_v48  ;;  %v228_v9 = vpop.f32.mrb[7].mxu0 }
 0x125   :  { %335 = vst [vmem:[%s871_s3 + $0x38] sm:$0xff] %v323_v6  ;;  %v229_v10 = vadd.f32 %v228_v9, %v140_v48 }
 0x126   :  { %v325_v11 = vmax.f32 %v227_v8, 0.0 }
 0x127   :  { %v326_v12 = vmax.f32 %v229_v10, 0.0 }
 0x128   :  { %337 = vst [vmem:[%s871_s3 + $0x48] sm:$0xff] %v325_v11 }
 0x129   :  { %338 = vst [vmem:[%s871_s3 + $0x50] sm:$0xff] %v326_v12 }

// kernel: _lambda_.6
= control target key start
LH: loop header
LB: loop body
LE: loop exit
PB: predicated region body
PF: predicated region fallthrough
CT: control target
= control target key end

     0   :  { %v460_v3 = vmov 0.0   ;;  %v461_v4 = vmov 0   ;;  %s846_s1 = inlined_call_operand.vmem [shape: f32[384,256], index: 1, kind: input, shape index: {}]   ;;  %s847_s0 = inlined_call_operand.vmem [shape: f32[32,384], index: 0, kind: input, shape index: {}]   ;;  %s848_s2 = inlined_call_operand.vmem [shape: f32[32,1], index: 2, kind: input, shape index: {}]   ;;  %s849_s3 = inlined_call_operand.vmem [shape: f32[32,256], index: 3, kind: output, shape index: {}]  }
   0x1   :  { %v27_v0 = vld [vmem:[%s846_s1 + $0x8] sm:$0xff]  ;;  %v29_v1 = vld [vmem:[%s846_s1 + $0x18] sm:$0xff]  ;;  %v26_v2 = vld [vmem:[%s846_s1] sm:$0xff]  ;;  %299 = vmatprep.mubr.f32.mxu0 %v460_v3  ;;  %458 = vset.pattern.permute.xlu0 %v461_v4 }
   0x2   :  { %v344_v5 = vpack.c.bf16 %v29_v1, %v27_v0  ;;  %v28_v6 = vld [vmem:[%s846_s1 + $0x10] sm:$0xff]  ;;  %v31_v7 = vld [vmem:[%s846_s1 + $0x28] sm:$0xff]  ;;  %v33_v8 = vld [vmem:[%s846_s1 + $0x38] sm:$0xff]  ;;  %459 = vset.pattern.permute.xlu1 %v461_v4 }
   0x3   :  { %v346_v9 = vpack.c.bf16 %v28_v6, %v26_v2  ;;  %v348_v10 = vpack.c.bf16 %v33_v8, %v31_v7  ;;  %v30_v11 = vld [vmem:[%s846_s1 + $0x20] sm:$0xff]  ;;  %v32_v12 = vld [vmem:[%s846_s1 + $0x30] sm:$0xff]  ;;  %v35_v13 = vld [vmem:[%s846_s1 + $0x48] sm:$0xff] }
   0x4   :  { %345 = vmatprep.subr.bf16.mxu1 %v344_v5  ;;  %v37_v14 = vld [vmem:[%s846_s1 + $0x58] sm:$0xff]  ;;  %v350_v15 = vpack.c.bf16 %v32_v12, %v30_v11  ;;  %v34_v17 = vld [vmem:[%s846_s1 + $0x40] sm:$0xff]  ;;  %v36_v18 = vld [vmem:[%s846_s1 + $0x50] sm:$0xff] }
   0x5   :  { %347 = vmatpush1.bf16.msra.mxu1 %v346_v9  ;;  %v352_v16 = vpack.c.bf16 %v37_v14, %v35_v13  ;;  %v39_v19 = vld [vmem:[%s846_s1 + $0x68] sm:$0xff]  ;;  %v41_v20 = vld [vmem:[%s846_s1 + $0x78] sm:$0xff]  ;;  %v354_v21 = vpack.c.bf16 %v36_v18, %v34_v17  ;;  %v38_v23 = vld [vmem:[%s846_s1 + $0x60] sm:$0xff] }
   0x6   :  { %349 = vmatprep.subr.bf16.mxu1 %v348_v10  ;;  %v356_v22 = vpack.c.bf16 %v41_v20, %v39_v19  ;;  %v40_v24 = vld [vmem:[%s846_s1 + $0x70] sm:$0xff]  ;;  %v43_v25 = vld [vmem:[%s846_s1 + $0x88] sm:$0xff]  ;;  %v45_v26 = vld [vmem:[%s846_s1 + $0x98] sm:$0xff] }
   0x7   :  { %v358_v27 = vpack.c.bf16 %v40_v24, %v38_v23  ;;  %v91_v28 = vld [vmem:[%s846_s1 + $0x208] sm:$0xff]  ;;  %v93_v29 = vld [vmem:[%s846_s1 + $0x218] sm:$0xff]  ;;  %v90_v30 = vld [vmem:[%s846_s1 + $0x200] sm:$0xff]  ;;  %v360_v31 = vpack.c.bf16 %v45_v26, %v43_v25 }
   0x8   :  { %v42_v32 = vld [vmem:[%s846_s1 + $0x80] sm:$0xff]  ;;  %v44_v33 = vld [vmem:[%s846_s1 + $0x90] sm:$0xff]  ;;  %v408_v34 = vpack.c.bf16 %v93_v29, %v91_v28  ;;  %v47_v36 = vld [vmem:[%s846_s1 + $0xa8] sm:$0xff] }
   0x9   :  { %351 = vmatpush1.bf16.msra.mxu1 %v350_v15  ;;  %v92_v35 = vld [vmem:[%s846_s1 + $0x210] sm:$0xff]  ;;  %v49_v37 = vld [vmem:[%s846_s1 + $0xb8] sm:$0xff]  ;;  %v95_v39 = vld [vmem:[%s846_s1 + $0x228] sm:$0xff]  ;;  %v362_v43 = vpack.c.bf16 %v44_v33, %v42_v32 }
   0xa   :  { %353 = vmatprep.subr.bf16.mxu1 %v352_v16  ;;  %v410_v38 = vpack.c.bf16 %v92_v35, %v90_v30  ;;  %409 = vmatprep.subr.bf16.mxu0 %v408_v34  ;;  %v97_v40 = vld [vmem:[%s846_s1 + $0x238] sm:$0xff]  ;;  %v94_v41 = vld [vmem:[%s846_s1 + $0x220] sm:$0xff]  ;;  %v96_v42 = vld [vmem:[%s846_s1 + $0x230] sm:$0xff]  ;;  %v364_v48 = vpack.c.bf16 %v49_v37, %v47_v36 }
   0xb   :  { %v46_v44 = vld [vmem:[%s846_s1 + $0xa0] sm:$0xff]  ;;  %v48_v45 = vld [vmem:[%s846_s1 + $0xb0] sm:$0xff]  ;;  %v412_v46 = vpack.c.bf16 %v97_v40, %v95_v39  ;;  %v414_v47 = vpack.c.bf16 %v96_v42, %v94_v41  ;;  %v51_v49 = vld [vmem:[%s846_s1 + $0xc8] sm:$0xff] }
   0xc   :  { %411 = vmatpush1.bf16.msra.mxu0 %v410_v38  ;;  %v99_v50 = vld [vmem:[%s846_s1 + $0x248] sm:$0xff]  ;;  %v101_v51 = vld [vmem:[%s846_s1 + $0x258] sm:$0xff]  ;;  %v98_v54 = vld [vmem:[%s846_s1 + $0x240] sm:$0xff]  ;;  %v366_v56 = vpack.c.bf16 %v48_v45, %v46_v44 }
   0xd   :  { %355 = vmatpush1.bf16.msra.mxu1 %v354_v21  ;;  %v53_v52 = vld [vmem:[%s846_s1 + $0xd8] sm:$0xff]  ;;  %413 = vmatprep.subr.bf16.mxu0 %v412_v46  ;;  %v416_v53 = vpack.c.bf16 %v101_v51, %v99_v50  ;;  %v100_v55 = vld [vmem:[%s846_s1 + $0x250] sm:$0xff]  ;;  %v50_v57 = vld [vmem:[%s846_s1 + $0xc0] sm:$0xff] }
   0xe   :  { %357 = vmatprep.subr.bf16.mxu1 %v356_v22  ;;  %v418_v58 = vpack.c.bf16 %v100_v55, %v98_v54  ;;  %v103_v59 = vld [vmem:[%s846_s1 + $0x268] sm:$0xff]  ;;  %v105_v60 = vld [vmem:[%s846_s1 + $0x278] sm:$0xff]  ;;  %v368_v61 = vpack.c.bf16 %v53_v52, %v51_v49  ;;  %v52_v62 = vld [vmem:[%s846_s1 + $0xd0] sm:$0xff] }
   0xf   :  { %v420_v63 = vpack.c.bf16 %v105_v60, %v103_v59  ;;  %v102_v0 = vld [vmem:[%s846_s1 + $0x260] sm:$0xff]  ;;  %v104_v1 = vld [vmem:[%s846_s1 + $0x270] sm:$0xff]  ;;  %v55_v2 = vld [vmem:[%s846_s1 + $0xe8] sm:$0xff]  ;;  %v370_v7 = vpack.c.bf16 %v52_v62, %v50_v57 }
  0x10   :  { %415 = vmatpush1.bf16.msra.mxu0 %v414_v47  ;;  %v57_v4 = vld [vmem:[%s846_s1 + $0xf8] sm:$0xff]  ;;  %v107_v5 = vld [vmem:[%s846_s1 + $0x288] sm:$0xff]  ;;  %v54_v8 = vld [vmem:[%s846_s1 + $0xe0] sm:$0xff]  ;;  %v422_v10 = vpack.c.bf16 %v104_v1, %v102_v0 }
  0x11   :  { %359 = vmatpush1.bf16.msra.mxu1 %v358_v27  ;;  %417 = vmatprep.subr.bf16.mxu0 %v416_v53  ;;  %v109_v6 = vld [vmem:[%s846_s1 + $0x298] sm:$0xff]  ;;  %v56_v9 = vld [vmem:[%s846_s1 + $0xf0] sm:$0xff]  ;;  %v372_v11 = vpack.c.bf16 %v57_v4, %v55_v2  ;;  %v59_v12 = vld [vmem:[%s846_s1 + $0x108] sm:$0xff] }
  0x12   :  { %361 = vmatprep.subr.bf16.mxu1 %v360_v31  ;;  %v424_v13 = vpack.c.bf16 %v109_v6, %v107_v5  ;;  %v106_v14 = vld [vmem:[%s846_s1 + $0x280] sm:$0xff]  ;;  %v108_v15 = vld [vmem:[%s846_s1 + $0x290] sm:$0xff]  ;;  %v61_v16 = vld [vmem:[%s846_s1 + $0x118] sm:$0xff]  ;;  %v374_v19 = vpack.c.bf16 %v56_v9, %v54_v8 }
  0x13   :  { %v111_v17 = vld [vmem:[%s846_s1 + $0x2a8] sm:$0xff]  ;;  %v113_v18 = vld [vmem:[%s846_s1 + $0x2b8] sm:$0xff]  ;;  %v58_v20 = vld [vmem:[%s846_s1 + $0x100] sm:$0xff]  ;;  %v426_v22 = vpack.c.bf16 %v108_v15, %v106_v14  ;;  %v376_v23 = vpack.c.bf16 %v61_v16, %v59_v12 }
  0x14   :  { %419 = vmatpush1.bf16.msra.mxu0 %v418_v58  ;;  %v60_v21 = vld [vmem:[%s846_s1 + $0x110] sm:$0xff]  ;;  %v63_v24 = vld [vmem:[%s846_s1 + $0x128] sm:$0xff]  ;;  %v428_v25 = vpack.c.bf16 %v113_v18, %v111_v17  ;;  %v110_v26 = vld [vmem:[%s846_s1 + $0x2a0] sm:$0xff] }
  0x15   :  { %363 = vmatpush1.bf16.msra.mxu1 %v362_v43  ;;  %421 = vmatprep.subr.bf16.mxu0 %v420_v63  ;;  %v112_v27 = vld [vmem:[%s846_s1 + $0x2b0] sm:$0xff]  ;;  %v65_v28 = vld [vmem:[%s846_s1 + $0x138] sm:$0xff]  ;;  %v115_v29 = vld [vmem:[%s846_s1 + $0x2c8] sm:$0xff]  ;;  %v378_v31 = vpack.c.bf16 %v60_v21, %v58_v20 }
  0x16   :  { %365 = vmatprep.subr.bf16.mxu1 %v364_v48  ;;  %v117_v30 = vld [vmem:[%s846_s1 + $0x2d8] sm:$0xff]  ;;  %v62_v32 = vld [vmem:[%s846_s1 + $0x120] sm:$0xff]  ;;  %v64_v33 = vld [vmem:[%s846_s1 + $0x130] sm:$0xff]  ;;  %v430_v34 = vpack.c.bf16 %v112_v27, %v110_v26  ;;  %v380_v36 = vpack.c.bf16 %v65_v28, %v63_v24 }
  0x17   :  { %v15_v35 = vld [vmem:[%s847_s0 + $0x8] sm:$0xff]  ;;  %v432_v38 = vpack.c.bf16 %v117_v30, %v115_v29  ;;  %v114_v39 = vld [vmem:[%s846_s1 + $0x2c0] sm:$0xff]  ;;  %v116_v40 = vld [vmem:[%s846_s1 + $0x2d0] sm:$0xff]  ;;  %v382_v44 = vpack.c.bf16 %v64_v33, %v62_v32 }
  0x18   :  { %423 = vmatpush1.bf16.msra.mxu0 %v422_v10  ;;  %v67_v37 = vld [vmem:[%s846_s1 + $0x148] sm:$0xff]  ;;  %v69_v41 = vld [vmem:[%s846_s1 + $0x158] sm:$0xff]  ;;  %210 = vmatprep.mubr.f32.mxu1 %v15_v35  ;;  %v66_v45 = vld [vmem:[%s846_s1 + $0x140] sm:$0xff]  ;;  %v434_v46 = vpack.c.bf16 %v116_v40, %v114_v39 }
  0x19   :  { %367 = vmatpush1.bf16.msra.mxu1 %v366_v56  ;;  %425 = vmatprep.subr.bf16.mxu0 %v424_v13  ;;  %v119_v42 = vld [vmem:[%s846_s1 + $0x2e8] sm:$0xff]  ;;  %v121_v43 = vld [vmem:[%s846_s1 + $0x2f8] sm:$0xff]  ;;  %v122_v47 = vld [vmem:[%s848_s2] sm:$0xff]  ;;  %v384_v49 = vpack.c.bf16 %v69_v41, %v67_v37 }
  0x1a   :  { %369 = vmatprep.subr.bf16.mxu1 %v368_v61  ;;  %v124_v48 = vld [vmem:[%s848_s2 + $0x10] sm:$0xff]  ;;  %v436_v51 = vpack.c.bf16 %v121_v43, %v119_v42  ;;  %v118_v52 = vld [vmem:[%s846_s1 + $0x2e0] sm:$0xff]  ;;  %v71_v54 = vld [vmem:[%s846_s1 + $0x168] sm:$0xff]  ;;  %128 = vperm.xlu0 %458, %v122_v47  }
  0x1b   :  { %v68_v50 = vld [vmem:[%s846_s1 + $0x150] sm:$0xff]  ;;  %v73_v55 = vld [vmem:[%s846_s1 + $0x178] sm:$0xff]  ;;  %138 = vperm.xlu1 %459, %v124_v48   ;;  %v123_v56 = vld [vmem:[%s848_s2 + $0x8] sm:$0xff] }
  0x1c   :  { %427 = vmatpush1.bf16.msra.mxu0 %v426_v22  ;;  %v120_v53 = vld [vmem:[%s846_s1 + $0x2f0] sm:$0xff]  ;;  %v125_v57 = vld [vmem:[%s848_s2 + $0x18] sm:$0xff]  ;;  %v386_v58 = vpack.c.bf16 %v68_v50, %v66_v45  ;;  %v388_v60 = vpack.c.bf16 %v73_v55, %v71_v54  ;;  %v70_v61 = vld [vmem:[%s846_s1 + $0x160] sm:$0xff] }
  0x1d   :  { %371 = vmatpush1.bf16.msra.mxu1 %v370_v7  ;;  %429 = vmatprep.subr.bf16.mxu0 %v428_v25  ;;  %v438_v59 = vpack.c.bf16 %v120_v53, %v118_v52  ;;  %v72_v62 = vld [vmem:[%s846_s1 + $0x170] sm:$0xff]  ;;  %v75_v63 = vld [vmem:[%s846_s1 + $0x188] sm:$0xff]  ;;  %v77_v0 = vld [vmem:[%s846_s1 + $0x198] sm:$0xff] }
  0x1e   :  { %373 = vmatprep.subr.bf16.mxu1 %v372_v11  ;;  %133 = vperm.xlu0 %458, %v123_v56   ;;  %v390_v1 = vpack.c.bf16 %v72_v62, %v70_v61  ;;  %v16_v2 = vld [vmem:[%s847_s0 + $0x10] sm:$0xff]  ;;  %v392_v4 = vpack.c.bf16 %v77_v0, %v75_v63  ;;  %v74_v5 = vld [vmem:[%s846_s1 + $0x180] sm:$0xff]  ;;  %v79_v7 = vld [vmem:[%s846_s1 + $0x1a8] sm:$0xff] }
  0x1f   :  { %143 = vperm.xlu1 %459, %v125_v57   ;;  %v76_v6 = vld [vmem:[%s846_s1 + $0x190] sm:$0xff]  ;;  %v81_v8 = vld [vmem:[%s846_s1 + $0x1b8] sm:$0xff]  ;;  %v19_v10 = vld [vmem:[%s847_s0 + $0x28] sm:$0xff] }
  0x20   :  { %431 = vmatpush1.bf16.msra.mxu0 %v430_v34  ;;  %v394_v9 = vpack.c.bf16 %v76_v6, %v74_v5  ;;  %v396_v11 = vpack.c.bf16 %v81_v8, %v79_v7  ;;  %v78_v12 = vld [vmem:[%s846_s1 + $0x1a0] sm:$0xff]  ;;  %v80_v13 = vld [vmem:[%s846_s1 + $0x1b0] sm:$0xff]  ;;  %v83_v14 = vld [vmem:[%s846_s1 + $0x1c8] sm:$0xff] }
  0x21   :  { %375 = vmatpush1.bf16.msra.mxu1 %v374_v19  ;;  %433 = vmatprep.subr.bf16.mxu0 %v432_v38  ;;  %v85_v15 = vld [vmem:[%s846_s1 + $0x1d8] sm:$0xff]  ;;  %v398_v16 = vpack.c.bf16 %v80_v13, %v78_v12  ;;  %v22_v17 = vld [vmem:[%s847_s0 + $0x40] sm:$0xff]  ;;  %v84_v20 = vld [vmem:[%s846_s1 + $0x1d0] sm:$0xff] }
  0x22   :  { %377 = vmatprep.subr.bf16.mxu1 %v376_v23  ;;  %v400_v18 = vpack.c.bf16 %v85_v15, %v83_v14  ;;  %v82_v19 = vld [vmem:[%s846_s1 + $0x1c0] sm:$0xff]  ;;  %v87_v21 = vld [vmem:[%s846_s1 + $0x1e8] sm:$0xff]  ;;  %v89_v22 = vld [vmem:[%s846_s1 + $0x1f8] sm:$0xff] }
  0x23   :  { %v402_v23 = vpack.c.bf16 %v84_v20, %v82_v19  ;;  %v25_v24 = vld [vmem:[%s847_s0 + $0x58] sm:$0xff]  ;;  %v404_v25 = vpack.c.bf16 %v89_v22, %v87_v21  ;;  %v86_v26 = vld [vmem:[%s846_s1 + $0x1e0] sm:$0xff]  ;;  %v88_v27 = vld [vmem:[%s846_s1 + $0x1f0] sm:$0xff] }
  0x24   :  { %435 = vmatpush1.bf16.msra.mxu0 %v434_v46  ;;  %v406_v28 = vpack.c.bf16 %v88_v27, %v86_v26  ;;  %v18_v29 = vld [vmem:[%s847_s0 + $0x20] sm:$0xff]  ;;  %v17_v30 = vld [vmem:[%s847_s0 + $0x18] sm:$0xff]  ;;  %v20_v32 = vld [vmem:[%s847_s0 + $0x30] sm:$0xff] }
  0x25   :  { %379 = vmatpush1.bf16.msra.mxu1 %v378_v31  ;;  %437 = vmatprep.subr.bf16.mxu0 %v436_v51  ;;  %v21_v31 = vld [vmem:[%s847_s0 + $0x38] sm:$0xff]  ;;  %v24_v33 = vld [vmem:[%s847_s0 + $0x50] sm:$0xff]  ;;  %v23_v34 = vld [vmem:[%s847_s0 + $0x48] sm:$0xff] }
  0x26   :  { %381 = vmatprep.subr.bf16.mxu1 %v380_v36 }
  0x28   :  { %439 = vmatpush1.bf16.msra.mxu0 %v438_v59 }
  0x29   :  { %383 = vmatpush1.bf16.msra.mxu1 %v382_v44 }
  0x2a   :  { %385 = vmatprep.subr.bf16.mxu1 %v384_v49 }
  0x2b   :  { %300 = vmatmul.mubr.f32.vlgmr.msra.gmra.mrb[0].mxu0 %v16_v2 }
  0x2c   :  { %305 = vmatprep.mubr.f32.mxu0 %v460_v3 }
  0x2d   :  { %387 = vmatpush1.bf16.msra.mxu1 %v386_v58 }
  0x2e   :  { %389 = vmatprep.subr.bf16.mxu1 %v388_v60 }
  0x2f   :  { %306 = vmatmul.mubr.f32.gmra.mrb[2].mxu0 %v19_v10 }
  0x30   :  { %311 = vmatprep.mubr.f32.mxu0 %v460_v3 }
  0x31   :  { %391 = vmatpush1.bf16.msra.mxu1 %v390_v1 }
  0x32   :  { %393 = vmatprep.subr.bf16.mxu1 %v392_v4 }
  0x33   :  { %312 = vmatmul.mubr.f32.gmra.mrb[4].mxu0 %v22_v17 }
  0x34   :  { %317 = vmatprep.mubr.f32.mxu0 %v460_v3  ;;  %v14_v3 = vld [vmem:[%s847_s0] sm:$0xff] }
  0x35   :  { %395 = vmatpush1.bf16.msra.mxu1 %v394_v9 }
  0x36   :  { %397 = vmatprep.subr.bf16.mxu1 %v396_v11 }
  0x37   :  { %318 = vmatmul.mubr.f32.gmra.mrb[6].mxu0 %v25_v24 }
  0x39   :  { %399 = vmatpush1.bf16.msra.mxu1 %v398_v16 }
  0x3a   :  { %401 = vmatprep.subr.bf16.mxu1 %v400_v18 }
  0x3d   :  { %403 = vmatpush1.bf16.msra.mxu1 %v402_v23 }
  0x3e   :  { %405 = vmatprep.subr.bf16.mxu1 %v404_v25 }
  0x41   :  { %407 = vmatpush1.bf16.msra.mxu1 %v406_v28 }
  0x44   :  { %211 = vmatmul.mubr.f32.vlgmr.msra.gmra.mrb[0].mxu1 %v14_v3 }
  0x45   :  { %216 = vmatprep.mubr.f32.mxu1 %v18_v29 }
  0x48   :  { %217 = vmatmul.mubr.f32.gmra.mrb[2].mxu1 %v17_v30 }
  0x49   :  { %222 = vmatprep.mubr.f32.mxu1 %v21_v31 }
  0x4c   :  { %223 = vmatmul.mubr.f32.gmra.mrb[4].mxu1 %v20_v32 }
  0x4d   :  { %228 = vmatprep.mubr.f32.mxu1 %v24_v33 }
  0x50   :  { %229 = vmatmul.mubr.f32.gmra.mrb[6].mxu1 %v23_v34 }
  0x99   :  { %v129_v43 = vpop.permute.xlu0 %128 }
  0x9a   :  { %v139_v56 = vpop.permute.xlu1 %138 }
  0x9d   :  { %v134_v48 = vpop.permute.xlu0 %133 }
  0x9e   :  { %v144_v4 = vpop.permute.xlu1 %143 }
  0xfe   :  { %v301_v35 = vpop.f32.mrb[0].mxu0 }
  0xff   :  { %v303_v36 = vpop.f32.mrb[1].mxu0 }
 0x102   :  { %v307_v37 = vpop.f32.mrb[2].mxu0 }
 0x103   :  { %v309_v38 = vpop.f32.mrb[3].mxu0 }
 0x106   :  { %v313_v39 = vpop.f32.mrb[4].mxu0 }
 0x107   :  { %v315_v40 = vpop.f32.mrb[5].mxu0 }
 0x10a   :  { %v319_v41 = vpop.f32.mrb[6].mxu0 }
 0x10b   :  { %v321_v42 = vpop.f32.mrb[7].mxu0 }
 0x117   :  { %v212_v44 = vpop.f32.mrb[0].mxu1 }
 0x118   :  { %v213_v45 = vadd.f32 %v212_v44, %v129_v43  ;;  %v214_v46 = vpop.f32.mrb[1].mxu1 }
 0x119   :  { %v215_v47 = vadd.f32 %v214_v46, %v129_v43 }
 0x11a   :  { %v302_v49 = vadd.f32 %v301_v35, %v213_v45 }
 0x11b   :  { %v304_v50 = vadd.f32 %v303_v36, %v215_v47  ;;  %v218_v51 = vpop.f32.mrb[2].mxu1 }
 0x11c   :  { %v324_v52 = vmax.f32 %v302_v49, 0.0  ;;  %v219_v53 = vadd.f32 %v218_v51, %v134_v48  ;;  %v220_v54 = vpop.f32.mrb[3].mxu1 }
 0x11d   :  { %v325_v55 = vmax.f32 %v304_v50, 0.0  ;;  %v221_v57 = vadd.f32 %v220_v54, %v134_v48 }
 0x11e   :  { %332 = vst [vmem:[%s849_s3] sm:$0xff] %v324_v52  ;;  %v308_v58 = vadd.f32 %v307_v37, %v219_v53 }
 0x11f   :  { %333 = vst [vmem:[%s849_s3 + $0x8] sm:$0xff] %v325_v55  ;;  %v310_v59 = vadd.f32 %v309_v38, %v221_v57  ;;  %v224_v60 = vpop.f32.mrb[4].mxu1 }
 0x120   :  { %v326_v61 = vmax.f32 %v308_v58, 0.0  ;;  %v225_v62 = vadd.f32 %v224_v60, %v139_v56  ;;  %v226_v63 = vpop.f32.mrb[5].mxu1 }
 0x121   :  { %v327_v0 = vmax.f32 %v310_v59, 0.0  ;;  %v227_v1 = vadd.f32 %v226_v63, %v139_v56 }
 0x122   :  { %334 = vst [vmem:[%s849_s3 + $0x10] sm:$0xff] %v326_v61  ;;  %v314_v2 = vadd.f32 %v313_v39, %v225_v62 }
 0x123   :  { %335 = vst [vmem:[%s849_s3 + $0x18] sm:$0xff] %v327_v0  ;;  %v316_v5 = vadd.f32 %v315_v40, %v227_v1  ;;  %v230_v6 = vpop.f32.mrb[6].mxu1 }
 0x124   :  { %v328_v7 = vmax.f32 %v314_v2, 0.0  ;;  %v231_v8 = vadd.f32 %v230_v6, %v144_v4  ;;  %v232_v9 = vpop.f32.mrb[7].mxu1 }
 0x125   :  { %v329_v10 = vmax.f32 %v316_v5, 0.0  ;;  %v233_v11 = vadd.f32 %v232_v9, %v144_v4 }
 0x126   :  { %336 = vst [vmem:[%s849_s3 + $0x20] sm:$0xff] %v328_v7  ;;  %v320_v12 = vadd.f32 %v319_v41, %v231_v8 }
 0x127   :  { %337 = vst [vmem:[%s849_s3 + $0x28] sm:$0xff] %v329_v10  ;;  %v322_v13 = vadd.f32 %v321_v42, %v233_v11 }
 0x128   :  { %v330_v14 = vmax.f32 %v320_v12, 0.0 }
 0x129   :  { %v331_v15 = vmax.f32 %v322_v13, 0.0 }
 0x12a   :  { %338 = vst [vmem:[%s849_s3 + $0x30] sm:$0xff] %v330_v14 }
 0x12b   :  { %339 = vst [vmem:[%s849_s3 + $0x38] sm:$0xff] %v331_v15 }

// kernel: _lambda_.7
= control target key start
LH: loop header
LB: loop body
LE: loop exit
PB: predicated region body
PF: predicated region fallthrough
CT: control target
= control target key end

     0   :  { %vm2423_vm0 = vmmov 0   ;;  %s3803_s1 = inlined_call_operand.vmem [shape: f32[3200,128], index: 1, kind: input, shape index: {}]   ;;  %s3804_s0 = inlined_call_operand.vmem [shape: f32[8,3200], index: 0, kind: input, shape index: {}]   ;;  %s3805_s2 = inlined_call_operand.vmem [shape: f32[1,128], index: 2, kind: input, shape index: {}]   ;;  %s3806_s3 = inlined_call_operand.vmem [shape: f32[128,128], index: 3, kind: input, shape index: {}]   ;;  %s3807_s4 = inlined_call_operand.vmem [shape: f32[1,128], index: 4, kind: input, shape index: {}]   ;;  %s3808_s5 = inlined_call_operand.vmem [shape: f32[8,128], index: 5, kind: output, shape index: {}]  }
   0x1   :  { %v61_v0 = vld [vmem:[%s3803_s1 + $0x80] sm:$0xff]  ;;  %v62_v1 = vld [vmem:[%s3803_s1 + $0x88] sm:$0xff]  ;;  %v63_v11 = vld [vmem:[%s3803_s1 + $0x90] sm:$0xff] }
   0x2   :  { %v45_v2 = vld [vmem:[%s3803_s1] sm:$0xff]  ;;  %v1987_v3 = vpack.c.bf16 %v62_v1, %v61_v0  ;;  %v46_v4 = vld [vmem:[%s3803_s1 + $0x8] sm:$0xff]  ;;  %v64_v13 = vld [vmem:[%s3803_s1 + $0x98] sm:$0xff] }
   0x3   :  { %v93_v5 = vld [vmem:[%s3803_s1 + $0x180] sm:$0xff]  ;;  %v94_v6 = vld [vmem:[%s3803_s1 + $0x188] sm:$0xff]  ;;  %v1989_v7 = vpack.c.bf16 %v46_v4, %v45_v2  ;;  %v47_v14 = vld [vmem:[%s3803_s1 + $0x10] sm:$0xff]  ;;  %v1991_v16 = vpack.c.bf16 %v64_v13, %v63_v11 }
   0x4   :  { %v2019_v8 = vpack.c.bf16 %v94_v6, %v93_v5  ;;  %v77_v9 = vld [vmem:[%s3803_s1 + $0x100] sm:$0xff]  ;;  %v78_v10 = vld [vmem:[%s3803_s1 + $0x108] sm:$0xff]  ;;  %1988 = vmatprep.subr.bf16.mxu0 %v1987_v3  ;;  %v48_v15 = vld [vmem:[%s3803_s1 + $0x18] sm:$0xff] }
   0x5   :  { %v2021_v12 = vpack.c.bf16 %v78_v10, %v77_v9  ;;  %1990 = vmatpush3.bf16.msra.mxu0 %v1989_v7  ;;  %v1993_v17 = vpack.c.bf16 %v48_v15, %v47_v14  ;;  %v95_v18 = vld [vmem:[%s3803_s1 + $0x190] sm:$0xff]  ;;  %v96_v19 = vld [vmem:[%s3803_s1 + $0x198] sm:$0xff]  ;;  %v65_v23 = vld [vmem:[%s3803_s1 + $0xa0] sm:$0xff] }
   0x6   :  { %2020 = vmatprep.subr.bf16.mxu1 %v2019_v8  ;;  %v79_v20 = vld [vmem:[%s3803_s1 + $0x110] sm:$0xff]  ;;  %v2023_v21 = vpack.c.bf16 %v96_v19, %v95_v18  ;;  %v80_v22 = vld [vmem:[%s3803_s1 + $0x118] sm:$0xff]  ;;  %v66_v24 = vld [vmem:[%s3803_s1 + $0xa8] sm:$0xff]  ;;  %1992 = vmatprep.subr.bf16.mxu0 %v1991_v16 }
   0x7   :  { %2022 = vmatpush3.bf16.msra.mxu1 %v2021_v12  ;;  %v2025_v25 = vpack.c.bf16 %v80_v22, %v79_v20  ;;  %v1995_v26 = vpack.c.bf16 %v66_v24, %v65_v23  ;;  %v49_v27 = vld [vmem:[%s3803_s1 + $0x20] sm:$0xff]  ;;  %v50_v28 = vld [vmem:[%s3803_s1 + $0x28] sm:$0xff]  ;;  %v67_v35 = vld [vmem:[%s3803_s1 + $0xb0] sm:$0xff] }
   0x8   :  { %v97_v29 = vld [vmem:[%s3803_s1 + $0x1a0] sm:$0xff]  ;;  %2024 = vmatprep.subr.bf16.mxu1 %v2023_v21  ;;  %v98_v30 = vld [vmem:[%s3803_s1 + $0x1a8] sm:$0xff]  ;;  %v1997_v33 = vpack.c.bf16 %v50_v28, %v49_v27  ;;  %v68_v36 = vld [vmem:[%s3803_s1 + $0xb8] sm:$0xff] }
   0x9   :  { %v81_v31 = vld [vmem:[%s3803_s1 + $0x120] sm:$0xff]  ;;  %v82_v32 = vld [vmem:[%s3803_s1 + $0x128] sm:$0xff]  ;;  %1994 = vmatpush3.bf16.msra.mxu0 %v1993_v17  ;;  %v2027_v34 = vpack.c.bf16 %v98_v30, %v97_v29  ;;  %v51_v37 = vld [vmem:[%s3803_s1 + $0x30] sm:$0xff]  ;;  %v1999_v39 = vpack.c.bf16 %v68_v36, %v67_v35 }
   0xa   :  { %1996 = vmatprep.subr.bf16.mxu0 %v1995_v26  ;;  %v2029_v38 = vpack.c.bf16 %v82_v32, %v81_v31  ;;  %v52_v40 = vld [vmem:[%s3803_s1 + $0x38] sm:$0xff]  ;;  %v99_v41 = vld [vmem:[%s3803_s1 + $0x1b0] sm:$0xff]  ;;  %v69_v46 = vld [vmem:[%s3803_s1 + $0xc0] sm:$0xff] }
   0xb   :  { %2026 = vmatpush3.bf16.msra.mxu1 %v2025_v25  ;;  %v100_v42 = vld [vmem:[%s3803_s1 + $0x1b8] sm:$0xff]  ;;  %v83_v44 = vld [vmem:[%s3803_s1 + $0x130] sm:$0xff]  ;;  %v70_v47 = vld [vmem:[%s3803_s1 + $0xc8] sm:$0xff]  ;;  %v2001_v48 = vpack.c.bf16 %v52_v40, %v51_v37 }
   0xc   :  { %2028 = vmatprep.subr.bf16.mxu1 %v2027_v34  ;;  %v2031_v43 = vpack.c.bf16 %v100_v42, %v99_v41  ;;  %v84_v45 = vld [vmem:[%s3803_s1 + $0x138] sm:$0xff]  ;;  %v101_v49 = vld [vmem:[%s3803_s1 + $0x1c0] sm:$0xff]  ;;  %v102_v50 = vld [vmem:[%s3803_s1 + $0x1c8] sm:$0xff]  ;;  %v2003_v52 = vpack.c.bf16 %v70_v47, %v69_v46 }
   0xd   :  { %1998 = vmatpush3.bf16.msra.mxu0 %v1997_v33  ;;  %v2033_v51 = vpack.c.bf16 %v84_v45, %v83_v44  ;;  %v53_v53 = vld [vmem:[%s3803_s1 + $0x40] sm:$0xff]  ;;  %v54_v54 = vld [vmem:[%s3803_s1 + $0x48] sm:$0xff]  ;;  %v2035_v56 = vpack.c.bf16 %v102_v50, %v101_v49  ;;  %v71_v58 = vld [vmem:[%s3803_s1 + $0xd0] sm:$0xff] }
   0xe   :  { %2000 = vmatprep.subr.bf16.mxu0 %v1999_v39  ;;  %v85_v55 = vld [vmem:[%s3803_s1 + $0x140] sm:$0xff]  ;;  %v86_v57 = vld [vmem:[%s3803_s1 + $0x148] sm:$0xff]  ;;  %v72_v59 = vld [vmem:[%s3803_s1 + $0xd8] sm:$0xff]  ;;  %v2005_v62 = vpack.c.bf16 %v54_v54, %v53_v53 }
   0xf   :  { %2030 = vmatpush3.bf16.msra.mxu1 %v2029_v38  ;;  %v103_v60 = vld [vmem:[%s3803_s1 + $0x1d0] sm:$0xff]  ;;  %v104_v61 = vld [vmem:[%s3803_s1 + $0x1d8] sm:$0xff]  ;;  %v2037_v63 = vpack.c.bf16 %v86_v57, %v85_v55  ;;  %v2007_v0 = vpack.c.bf16 %v72_v59, %v71_v58  ;;  %v73_v6 = vld [vmem:[%s3803_s1 + $0xe0] sm:$0xff] }
  0x10   :  { %2032 = vmatprep.subr.bf16.mxu1 %v2031_v43  ;;  %v55_v1 = vld [vmem:[%s3803_s1 + $0x50] sm:$0xff]  ;;  %v56_v2 = vld [vmem:[%s3803_s1 + $0x58] sm:$0xff]  ;;  %v2039_v4 = vpack.c.bf16 %v104_v61, %v103_v60  ;;  %v74_v7 = vld [vmem:[%s3803_s1 + $0xe8] sm:$0xff] }
  0x11   :  { %2002 = vmatpush3.bf16.msra.mxu0 %v2001_v48  ;;  %v87_v3 = vld [vmem:[%s3803_s1 + $0x150] sm:$0xff]  ;;  %v88_v5 = vld [vmem:[%s3803_s1 + $0x158] sm:$0xff]  ;;  %v105_v8 = vld [vmem:[%s3803_s1 + $0x1e0] sm:$0xff]  ;;  %v2009_v10 = vpack.c.bf16 %v56_v2, %v55_v1  ;;  %v2011_v14 = vpack.c.bf16 %v74_v7, %v73_v6 }
  0x12   :  { %2004 = vmatprep.subr.bf16.mxu0 %v2003_v52  ;;  %v106_v9 = vld [vmem:[%s3803_s1 + $0x1e8] sm:$0xff]  ;;  %v57_v11 = vld [vmem:[%s3803_s1 + $0x60] sm:$0xff]  ;;  %v2041_v13 = vpack.c.bf16 %v88_v5, %v87_v3  ;;  %v75_v19 = vld [vmem:[%s3803_s1 + $0xf0] sm:$0xff] }
  0x13   :  { %2034 = vmatpush3.bf16.msra.mxu1 %v2033_v51  ;;  %v21_v12 = vld [vmem:[%s3804_s0 + $0x8] sm:$0xff]  ;;  %v89_v16 = vld [vmem:[%s3803_s1 + $0x160] sm:$0xff]  ;;  %v2043_v18 = vpack.c.bf16 %v106_v9, %v105_v8  ;;  %v76_v20 = vld [vmem:[%s3803_s1 + $0xf8] sm:$0xff] }
  0x14   :  { %2036 = vmatprep.subr.bf16.mxu1 %v2035_v56  ;;  %v58_v15 = vld [vmem:[%s3803_s1 + $0x68] sm:$0xff]  ;;  %516 = vmatprep.mubr.f32.mxu0 %v21_v12  ;;  %v23_v21 = vld [vmem:[%s3804_s0 + $0x18] sm:$0xff]  ;;  %v107_v22 = vld [vmem:[%s3803_s1 + $0x1f0] sm:$0xff]  ;;  %v2015_v26 = vpack.c.bf16 %v76_v20, %v75_v19 }
  0x15   :  { %2006 = vmatpush3.bf16.msra.mxu0 %v2005_v62  ;;  %v90_v17 = vld [vmem:[%s3803_s1 + $0x168] sm:$0xff]  ;;  %v108_v23 = vld [vmem:[%s3803_s1 + $0x1f8] sm:$0xff]  ;;  %586 = vmatprep.mubr.f32.mxu1 %v23_v21  ;;  %v2013_v24 = vpack.c.bf16 %v58_v15, %v57_v11  ;;  %v59_v27 = vld [vmem:[%s3803_s1 + $0x70] sm:$0xff] }
  0x16   :  { %2008 = vmatprep.subr.bf16.mxu0 %v2007_v0  ;;  %v2045_v25 = vpack.c.bf16 %v90_v17, %v89_v16  ;;  %v60_v28 = vld [vmem:[%s3803_s1 + $0x78] sm:$0xff]  ;;  %v91_v29 = vld [vmem:[%s3803_s1 + $0x170] sm:$0xff]  ;;  %v2047_v30 = vpack.c.bf16 %v108_v23, %v107_v22  ;;  %v125_v32 = vld [vmem:[%s3803_s1 + $0x280] sm:$0xff] }
  0x17   :  { %2038 = vmatpush3.bf16.msra.mxu1 %v2037_v63  ;;  %v92_v31 = vld [vmem:[%s3803_s1 + $0x178] sm:$0xff]  ;;  %v126_v33 = vld [vmem:[%s3803_s1 + $0x288] sm:$0xff]  ;;  %v157_v34 = vld [vmem:[%s3803_s1 + $0x380] sm:$0xff]  ;;  %v2017_v36 = vpack.c.bf16 %v60_v28, %v59_v27 }
  0x18   :  { %2040 = vmatprep.subr.bf16.mxu1 %v2039_v4  ;;  %v158_v35 = vld [vmem:[%s3803_s1 + $0x388] sm:$0xff]  ;;  %v2049_v37 = vpack.c.bf16 %v92_v31, %v91_v29  ;;  %v2051_v38 = vpack.c.bf16 %v126_v33, %v125_v32  ;;  %v109_v39 = vld [vmem:[%s3803_s1 + $0x200] sm:$0xff]  ;;  %v127_v44 = vld [vmem:[%s3803_s1 + $0x290] sm:$0xff] }
  0x19   :  { %2010 = vmatpush3.bf16.msra.mxu0 %v2009_v10  ;;  %v110_v40 = vld [vmem:[%s3803_s1 + $0x208] sm:$0xff]  ;;  %v141_v41 = vld [vmem:[%s3803_s1 + $0x300] sm:$0xff]  ;;  %v2083_v42 = vpack.c.bf16 %v158_v35, %v157_v34  ;;  %v128_v45 = vld [vmem:[%s3803_s1 + $0x298] sm:$0xff] }
  0x1a   :  { %2012 = vmatprep.subr.bf16.mxu0 %v2011_v14  ;;  %v142_v43 = vld [vmem:[%s3803_s1 + $0x308] sm:$0xff]  ;;  %v159_v46 = vld [vmem:[%s3803_s1 + $0x390] sm:$0xff]  ;;  %v160_v47 = vld [vmem:[%s3803_s1 + $0x398] sm:$0xff]  ;;  %v2053_v49 = vpack.c.bf16 %v110_v40, %v109_v39  ;;  %v2055_v52 = vpack.c.bf16 %v128_v45, %v127_v44 }
  0x1b   :  { %2042 = vmatpush3.bf16.msra.mxu1 %v2041_v13  ;;  %v20_v48 = vld [vmem:[%s3804_s0] sm:$0xff]  ;;  %v22_v50 = vld [vmem:[%s3804_s0 + $0x10] sm:$0xff]  ;;  %v2085_v51 = vpack.c.bf16 %v142_v43, %v141_v41  ;;  %v112_v54 = vld [vmem:[%s3803_s1 + $0x218] sm:$0xff]  ;;  %v2087_v56 = vpack.c.bf16 %v160_v47, %v159_v46 }
  0x1c   :  { %2044 = vmatprep.subr.bf16.mxu1 %v2043_v18  ;;  %v111_v53 = vld [vmem:[%s3803_s1 + $0x210] sm:$0xff]  ;;  %v144_v57 = vld [vmem:[%s3803_s1 + $0x318] sm:$0xff]  ;;  %v129_v58 = vld [vmem:[%s3803_s1 + $0x2a0] sm:$0xff] }
  0x1d   :  { %2014 = vmatpush3.bf16.msra.mxu0 %v2013_v24  ;;  %v143_v55 = vld [vmem:[%s3803_s1 + $0x310] sm:$0xff]  ;;  %v130_v59 = vld [vmem:[%s3803_s1 + $0x2a8] sm:$0xff]  ;;  %v161_v60 = vld [vmem:[%s3803_s1 + $0x3a0] sm:$0xff]  ;;  %v2057_v62 = vpack.c.bf16 %v112_v54, %v111_v53 }
  0x1e   :  { %2016 = vmatprep.subr.bf16.mxu0 %v2015_v26  ;;  %v162_v61 = vld [vmem:[%s3803_s1 + $0x3a8] sm:$0xff]  ;;  %v2089_v63 = vpack.c.bf16 %v144_v57, %v143_v55  ;;  %v2059_v0 = vpack.c.bf16 %v130_v59, %v129_v58  ;;  %v113_v1 = vld [vmem:[%s3803_s1 + $0x220] sm:$0xff]  ;;  %v131_v6 = vld [vmem:[%s3803_s1 + $0x2b0] sm:$0xff] }
  0x1f   :  { %2046 = vmatpush3.bf16.msra.mxu1 %v2045_v25  ;;  %v114_v2 = vld [vmem:[%s3803_s1 + $0x228] sm:$0xff]  ;;  %v145_v3 = vld [vmem:[%s3803_s1 + $0x320] sm:$0xff]  ;;  %v2091_v4 = vpack.c.bf16 %v162_v61, %v161_v60  ;;  %v132_v7 = vld [vmem:[%s3803_s1 + $0x2b8] sm:$0xff] }
  0x20   :  { %2048 = vmatprep.subr.bf16.mxu1 %v2047_v30  ;;  %v146_v5 = vld [vmem:[%s3803_s1 + $0x328] sm:$0xff]  ;;  %v163_v8 = vld [vmem:[%s3803_s1 + $0x3b0] sm:$0xff]  ;;  %v164_v9 = vld [vmem:[%s3803_s1 + $0x3b8] sm:$0xff]  ;;  %v2061_v10 = vpack.c.bf16 %v114_v2, %v113_v1  ;;  %v2063_v12 = vpack.c.bf16 %v132_v7, %v131_v6 }
  0x21   :  { %2018 = vmatpush3.bf16.msra.mxu0 %v2017_v36  ;;  %v2093_v11 = vpack.c.bf16 %v146_v5, %v145_v3  ;;  %v115_v13 = vld [vmem:[%s3803_s1 + $0x230] sm:$0xff]  ;;  %v116_v14 = vld [vmem:[%s3803_s1 + $0x238] sm:$0xff]  ;;  %v2095_v16 = vpack.c.bf16 %v164_v9, %v163_v8  ;;  %v133_v18 = vld [vmem:[%s3803_s1 + $0x2c0] sm:$0xff] }
  0x22   :  { %2052 = vmatprep.subr.bf16.mxu0 %v2051_v38  ;;  %v147_v15 = vld [vmem:[%s3803_s1 + $0x330] sm:$0xff]  ;;  %v148_v17 = vld [vmem:[%s3803_s1 + $0x338] sm:$0xff]  ;;  %v134_v19 = vld [vmem:[%s3803_s1 + $0x2c8] sm:$0xff]  ;;  %v2065_v23 = vpack.c.bf16 %v116_v14, %v115_v13 }
  0x23   :  { %2050 = vmatpush3.bf16.msra.mxu1 %v2049_v37  ;;  %v165_v20 = vld [vmem:[%s3803_s1 + $0x3c0] sm:$0xff]  ;;  %v166_v21 = vld [vmem:[%s3803_s1 + $0x3c8] sm:$0xff]  ;;  %v2097_v25 = vpack.c.bf16 %v148_v17, %v147_v15  ;;  %v2067_v26 = vpack.c.bf16 %v134_v19, %v133_v18  ;;  %v27_v29 = vld [vmem:[%s3804_s0 + $0x38] sm:$0xff] }
  0x24   :  { %2084 = vmatprep.subr.bf16.mxu1 %v2083_v42  ;;  %517 = vmatmul.mubr.f32.vlgmr.msra.gmra.mrb[0].mxu0 %v20_v48  ;;  %v25_v22 = vld [vmem:[%s3804_s0 + $0x28] sm:$0xff]  ;;  %v117_v24 = vld [vmem:[%s3803_s1 + $0x240] sm:$0xff]  ;;  %v2099_v30 = vpack.c.bf16 %v166_v21, %v165_v20  ;;  %v135_v32 = vld [vmem:[%s3803_s1 + $0x2d0] sm:$0xff] }
  0x25   :  { %2054 = vmatpush3.bf16.msra.mxu0 %v2053_v49  ;;  %656 = vmatprep.mubr.f32.mxu0 %v25_v22  ;;  %v118_v27 = vld [vmem:[%s3803_s1 + $0x248] sm:$0xff]  ;;  %v149_v28 = vld [vmem:[%s3803_s1 + $0x340] sm:$0xff]  ;;  %v136_v33 = vld [vmem:[%s3803_s1 + $0x2d8] sm:$0xff] }
  0x26   :  { %587 = vmatmul.mubr.f32.vlgmr.msra.gmra.mrb[0].mxu1 %v22_v50  ;;  %2056 = vmatprep.subr.bf16.mxu0 %v2055_v52  ;;  %v150_v31 = vld [vmem:[%s3803_s1 + $0x348] sm:$0xff]  ;;  %v167_v34 = vld [vmem:[%s3803_s1 + $0x3d0] sm:$0xff]  ;;  %v168_v35 = vld [vmem:[%s3803_s1 + $0x3d8] sm:$0xff]  ;;  %v2069_v36 = vpack.c.bf16 %v118_v27, %v117_v24  ;;  %v2071_v38 = vpack.c.bf16 %v136_v33, %v135_v32 }
  0x27   :  { %2086 = vmatpush3.bf16.msra.mxu1 %v2085_v51  ;;  %726 = vmatprep.mubr.f32.mxu1 %v27_v29  ;;  %v2101_v37 = vpack.c.bf16 %v150_v31, %v149_v28  ;;  %v119_v39 = vld [vmem:[%s3803_s1 + $0x250] sm:$0xff]  ;;  %v120_v40 = vld [vmem:[%s3803_s1 + $0x258] sm:$0xff]  ;;  %v2103_v42 = vpack.c.bf16 %v168_v35, %v167_v34  ;;  %v137_v44 = vld [vmem:[%s3803_s1 + $0x2e0] sm:$0xff] }
  0x28   :  { %2088 = vmatprep.subr.bf16.mxu1 %v2087_v56  ;;  %v151_v41 = vld [vmem:[%s3803_s1 + $0x350] sm:$0xff]  ;;  %v152_v43 = vld [vmem:[%s3803_s1 + $0x358] sm:$0xff]  ;;  %v138_v45 = vld [vmem:[%s3803_s1 + $0x2e8] sm:$0xff]  ;;  %v2073_v48 = vpack.c.bf16 %v120_v40, %v119_v39 }
  0x29   :  { %2058 = vmatpush3.bf16.msra.mxu0 %v2057_v62  ;;  %v169_v46 = vld [vmem:[%s3803_s1 + $0x3e0] sm:$0xff]  ;;  %v170_v47 = vld [vmem:[%s3803_s1 + $0x3e8] sm:$0xff]  ;;  %v2105_v49 = vpack.c.bf16 %v152_v43, %v151_v41  ;;  %v2075_v50 = vpack.c.bf16 %v138_v45, %v137_v44  ;;  %v139_v56 = vld [vmem:[%s3803_s1 + $0x2f0] sm:$0xff] }
  0x2a   :  { %2060 = vmatprep.subr.bf16.mxu0 %v2059_v0  ;;  %v121_v51 = vld [vmem:[%s3803_s1 + $0x260] sm:$0xff]  ;;  %v122_v52 = vld [vmem:[%s3803_s1 + $0x268] sm:$0xff]  ;;  %v2107_v54 = vpack.c.bf16 %v170_v47, %v169_v46  ;;  %v140_v57 = vld [vmem:[%s3803_s1 + $0x2f8] sm:$0xff] }
  0x2b   :  { %2090 = vmatpush3.bf16.msra.mxu1 %v2089_v63  ;;  %v153_v53 = vld [vmem:[%s3803_s1 + $0x360] sm:$0xff]  ;;  %v154_v55 = vld [vmem:[%s3803_s1 + $0x368] sm:$0xff]  ;;  %v171_v58 = vld [vmem:[%s3803_s1 + $0x3f0] sm:$0xff]  ;;  %v2077_v60 = vpack.c.bf16 %v122_v52, %v121_v51  ;;  %v2079_v62 = vpack.c.bf16 %v140_v57, %v139_v56 }
  0x2c   :  { %2092 = vmatprep.subr.bf16.mxu1 %v2091_v4  ;;  %v172_v59 = vld [vmem:[%s3803_s1 + $0x3f8] sm:$0xff]  ;;  %v2109_v61 = vpack.c.bf16 %v154_v55, %v153_v53  ;;  %v123_v63 = vld [vmem:[%s3803_s1 + $0x270] sm:$0xff]  ;;  %v189_v4 = vld [vmem:[%s3803_s1 + $0x480] sm:$0xff] }
  0x2d   :  { %2062 = vmatpush3.bf16.msra.mxu0 %v2061_v10  ;;  %v124_v0 = vld [vmem:[%s3803_s1 + $0x278] sm:$0xff]  ;;  %v155_v1 = vld [vmem:[%s3803_s1 + $0x370] sm:$0xff]  ;;  %v2111_v2 = vpack.c.bf16 %v172_v59, %v171_v58  ;;  %v190_v5 = vld [vmem:[%s3803_s1 + $0x488] sm:$0xff] }
  0x2e   :  { %2064 = vmatprep.subr.bf16.mxu0 %v2063_v12  ;;  %v156_v3 = vld [vmem:[%s3803_s1 + $0x378] sm:$0xff]  ;;  %v221_v6 = vld [vmem:[%s3803_s1 + $0x580] sm:$0xff]  ;;  %v222_v7 = vld [vmem:[%s3803_s1 + $0x588] sm:$0xff]  ;;  %v2081_v8 = vpack.c.bf16 %v124_v0, %v123_v63  ;;  %v2115_v10 = vpack.c.bf16 %v190_v5, %v189_v4 }
  0x2f   :  { %2094 = vmatpush3.bf16.msra.mxu1 %v2093_v11  ;;  %v2113_v9 = vpack.c.bf16 %v156_v3, %v155_v1  ;;  %v173_v11 = vld [vmem:[%s3803_s1 + $0x400] sm:$0xff]  ;;  %v174_v12 = vld [vmem:[%s3803_s1 + $0x408] sm:$0xff]  ;;  %v2147_v14 = vpack.c.bf16 %v222_v7, %v221_v6  ;;  %v192_v17 = vld [vmem:[%s3803_s1 + $0x498] sm:$0xff] }
  0x30   :  { %2096 = vmatprep.subr.bf16.mxu1 %v2095_v16  ;;  %v205_v13 = vld [vmem:[%s3803_s1 + $0x500] sm:$0xff]  ;;  %v206_v15 = vld [vmem:[%s3803_s1 + $0x508] sm:$0xff]  ;;  %v191_v16 = vld [vmem:[%s3803_s1 + $0x490] sm:$0xff]  ;;  %v2117_v21 = vpack.c.bf16 %v174_v12, %v173_v11 }
  0x31   :  { %2066 = vmatpush3.bf16.msra.mxu0 %v2065_v23  ;;  %v223_v18 = vld [vmem:[%s3803_s1 + $0x590] sm:$0xff]  ;;  %v224_v19 = vld [vmem:[%s3803_s1 + $0x598] sm:$0xff]  ;;  %v24_v20 = vld [vmem:[%s3804_s0 + $0x20] sm:$0xff]  ;;  %v2149_v23 = vpack.c.bf16 %v206_v15, %v205_v13  ;;  %v2119_v24 = vpack.c.bf16 %v192_v17, %v191_v16 }
  0x32   :  { %2068 = vmatprep.subr.bf16.mxu0 %v2067_v26  ;;  %v26_v22 = vld [vmem:[%s3804_s0 + $0x30] sm:$0xff]  ;;  %v176_v26 = vld [vmem:[%s3803_s1 + $0x418] sm:$0xff]  ;;  %v2151_v28 = vpack.c.bf16 %v224_v19, %v223_v18  ;;  %v194_v31 = vld [vmem:[%s3803_s1 + $0x4a8] sm:$0xff] }
  0x33   :  { %2098 = vmatpush3.bf16.msra.mxu1 %v2097_v25  ;;  %v175_v25 = vld [vmem:[%s3803_s1 + $0x410] sm:$0xff]  ;;  %v208_v29 = vld [vmem:[%s3803_s1 + $0x518] sm:$0xff]  ;;  %v225_v32 = vld [vmem:[%s3803_s1 + $0x5a0] sm:$0xff] }
  0x34   :  { %2100 = vmatprep.subr.bf16.mxu1 %v2099_v30  ;;  %v207_v27 = vld [vmem:[%s3803_s1 + $0x510] sm:$0xff]  ;;  %v193_v30 = vld [vmem:[%s3803_s1 + $0x4a0] sm:$0xff]  ;;  %v226_v33 = vld [vmem:[%s3803_s1 + $0x5a8] sm:$0xff]  ;;  %v2121_v35 = vpack.c.bf16 %v176_v26, %v175_v25 }
  0x35   :  { %2070 = vmatpush3.bf16.msra.mxu0 %v2069_v36  ;;  %v29_v34 = vld [vmem:[%s3804_s0 + $0x48] sm:$0xff]  ;;  %v31_v36 = vld [vmem:[%s3804_s0 + $0x58] sm:$0xff]  ;;  %v177_v39 = vld [vmem:[%s3803_s1 + $0x420] sm:$0xff] }
  0x36   :  { %2072 = vmatprep.subr.bf16.mxu0 %v2071_v38  ;;  %v2123_v38 = vpack.c.bf16 %v194_v31, %v193_v30  ;;  %v178_v40 = vld [vmem:[%s3803_s1 + $0x428] sm:$0xff]  ;;  %v209_v41 = vld [vmem:[%s3803_s1 + $0x520] sm:$0xff]  ;;  %v195_v44 = vld [vmem:[%s3803_s1 + $0x4b0] sm:$0xff] }
  0x37   :  { %2102 = vmatpush3.bf16.msra.mxu1 %v2101_v37  ;;  %v2153_v37 = vpack.c.bf16 %v208_v29, %v207_v27  ;;  %v210_v43 = vld [vmem:[%s3803_s1 + $0x528] sm:$0xff]  ;;  %v196_v45 = vld [vmem:[%s3803_s1 + $0x4b8] sm:$0xff]  ;;  %v227_v46 = vld [vmem:[%s3803_s1 + $0x5b0] sm:$0xff] }
  0x38   :  { %2104 = vmatprep.subr.bf16.mxu1 %v2103_v42  ;;  %v2155_v42 = vpack.c.bf16 %v226_v33, %v225_v32  ;;  %v228_v47 = vld [vmem:[%s3803_s1 + $0x5b8] sm:$0xff]  ;;  %v179_v51 = vld [vmem:[%s3803_s1 + $0x430] sm:$0xff]  ;;  %v197_v56 = vld [vmem:[%s3803_s1 + $0x4c0] sm:$0xff] }
  0x39   :  { %2074 = vmatpush3.bf16.msra.mxu0 %v2073_v48  ;;  %v2125_v48 = vpack.c.bf16 %v178_v40, %v177_v39  ;;  %v180_v52 = vld [vmem:[%s3803_s1 + $0x438] sm:$0xff]  ;;  %v211_v53 = vld [vmem:[%s3803_s1 + $0x530] sm:$0xff]  ;;  %v198_v57 = vld [vmem:[%s3803_s1 + $0x4c8] sm:$0xff] }
  0x3a   :  { %2076 = vmatprep.subr.bf16.mxu0 %v2075_v50  ;;  %v2127_v50 = vpack.c.bf16 %v196_v45, %v195_v44  ;;  %v212_v55 = vld [vmem:[%s3803_s1 + $0x538] sm:$0xff]  ;;  %v229_v58 = vld [vmem:[%s3803_s1 + $0x5c0] sm:$0xff]  ;;  %v230_v59 = vld [vmem:[%s3803_s1 + $0x5c8] sm:$0xff] }
  0x3b   :  { %2106 = vmatpush3.bf16.msra.mxu1 %v2105_v49  ;;  %v2157_v49 = vpack.c.bf16 %v210_v43, %v209_v41  ;;  %v181_v63 = vld [vmem:[%s3803_s1 + $0x440] sm:$0xff]  ;;  %v182_v0 = vld [vmem:[%s3803_s1 + $0x448] sm:$0xff]  ;;  %v199_v4 = vld [vmem:[%s3803_s1 + $0x4d0] sm:$0xff] }
  0x3c   :  { %2108 = vmatprep.subr.bf16.mxu1 %v2107_v54  ;;  %v2159_v54 = vpack.c.bf16 %v228_v47, %v227_v46  ;;  %v213_v1 = vld [vmem:[%s3803_s1 + $0x540] sm:$0xff]  ;;  %v214_v3 = vld [vmem:[%s3803_s1 + $0x548] sm:$0xff]  ;;  %v200_v5 = vld [vmem:[%s3803_s1 + $0x4d8] sm:$0xff] }
  0x3d   :  { %2078 = vmatpush3.bf16.msra.mxu0 %v2077_v60  ;;  %v2129_v60 = vpack.c.bf16 %v180_v52, %v179_v51  ;;  %v231_v6 = vld [vmem:[%s3803_s1 + $0x5d0] sm:$0xff]  ;;  %v232_v7 = vld [vmem:[%s3803_s1 + $0x5d8] sm:$0xff]  ;;  %v201_v16 = vld [vmem:[%s3803_s1 + $0x4e0] sm:$0xff] }
  0x3e   :  { %2080 = vmatprep.subr.bf16.mxu0 %v2079_v62  ;;  %v2131_v62 = vpack.c.bf16 %v198_v57, %v197_v56  ;;  %v183_v11 = vld [vmem:[%s3803_s1 + $0x450] sm:$0xff]  ;;  %v184_v12 = vld [vmem:[%s3803_s1 + $0x458] sm:$0xff]  ;;  %v202_v17 = vld [vmem:[%s3803_s1 + $0x4e8] sm:$0xff] }
  0x3f   :  { %2110 = vmatpush3.bf16.msra.mxu1 %v2109_v61  ;;  %v2161_v61 = vpack.c.bf16 %v212_v55, %v211_v53  ;;  %v215_v13 = vld [vmem:[%s3803_s1 + $0x550] sm:$0xff]  ;;  %v216_v15 = vld [vmem:[%s3803_s1 + $0x558] sm:$0xff]  ;;  %v233_v18 = vld [vmem:[%s3803_s1 + $0x5e0] sm:$0xff] }
  0x40   :  { %2112 = vmatprep.subr.bf16.mxu1 %v2111_v2  ;;  %v2163_v2 = vpack.c.bf16 %v230_v59, %v229_v58  ;;  %v234_v19 = vld [vmem:[%s3803_s1 + $0x5e8] sm:$0xff]  ;;  %v217_v25 = vld [vmem:[%s3803_s1 + $0x560] sm:$0xff]  ;;  %v204_v29 = vld [vmem:[%s3803_s1 + $0x4f8] sm:$0xff] }
  0x41   :  { %2082 = vmatpush3.bf16.msra.mxu0 %v2081_v8  ;;  %v2133_v8 = vpack.c.bf16 %v182_v0, %v181_v63  ;;  %v2171_v26 = vpack.c.bf16 %v234_v19, %v233_v18  ;;  %v218_v27 = vld [vmem:[%s3803_s1 + $0x568] sm:$0xff]  ;;  %v235_v30 = vld [vmem:[%s3803_s1 + $0x5f0] sm:$0xff]  ;;  %v236_v31 = vld [vmem:[%s3803_s1 + $0x5f8] sm:$0xff] }
  0x42   :  { %2116 = vmatprep.subr.bf16.mxu0 %v2115_v10  ;;  %v2135_v10 = vpack.c.bf16 %v200_v5, %v199_v4  ;;  %v2173_v33 = vpack.c.bf16 %v218_v27, %v217_v25  ;;  %v220_v39 = vld [vmem:[%s3803_s1 + $0x578] sm:$0xff]  ;;  %v253_v40 = vld [vmem:[%s3803_s1 + $0x680] sm:$0xff]  ;;  %v254_v41 = vld [vmem:[%s3803_s1 + $0x688] sm:$0xff] }
  0x43   :  { %2114 = vmatpush3.bf16.msra.mxu1 %v2113_v9  ;;  %v2165_v9 = vpack.c.bf16 %v214_v3, %v213_v1  ;;  %v286_v43 = vld [vmem:[%s3803_s1 + $0x788] sm:$0xff]  ;;  %v2179_v46 = vpack.c.bf16 %v254_v41, %v253_v40  ;;  %v237_v47 = vld [vmem:[%s3803_s1 + $0x600] sm:$0xff]  ;;  %v255_v52 = vld [vmem:[%s3803_s1 + $0x690] sm:$0xff] }
  0x44   :  { %2148 = vmatprep.subr.bf16.mxu1 %v2147_v14  ;;  %657 = vmatmul.mubr.f32.vlgmr.msra.gmra.mrb[2].mxu0 %v24_v20  ;;  %v2167_v14 = vpack.c.bf16 %v232_v7, %v231_v6  ;;  %v2137_v20 = vpack.c.bf16 %v184_v12, %v183_v11  ;;  %v270_v51 = vld [vmem:[%s3803_s1 + $0x708] sm:$0xff]  ;;  %v256_v53 = vld [vmem:[%s3803_s1 + $0x698] sm:$0xff]  ;;  %v28_v56 = vld [vmem:[%s3804_s0 + $0x40] sm:$0xff] }
  0x45   :  { %2118 = vmatpush3.bf16.msra.mxu0 %v2117_v21  ;;  %796 = vmatprep.mubr.f32.mxu0 %v29_v34  ;;  %v2169_v21 = vpack.c.bf16 %v216_v15, %v215_v13  ;;  %v288_v55 = vld [vmem:[%s3803_s1 + $0x798] sm:$0xff]  ;;  %v30_v58 = vld [vmem:[%s3804_s0 + $0x50] sm:$0xff]  ;;  %v258_v3 = vld [vmem:[%s3803_s1 + $0x6a8] sm:$0xff] }
  0x46   :  { %727 = vmatmul.mubr.f32.vlgmr.msra.gmra.mrb[2].mxu1 %v26_v22  ;;  %2120 = vmatprep.subr.bf16.mxu0 %v2119_v24  ;;  %v2139_v22 = vpack.c.bf16 %v202_v17, %v201_v16  ;;  %v186_v24 = vld [vmem:[%s3803_s1 + $0x468] sm:$0xff]  ;;  %v271_v63 = vld [vmem:[%s3803_s1 + $0x710] sm:$0xff]  ;;  %v272_v1 = vld [vmem:[%s3803_s1 + $0x718] sm:$0xff] }
  0x47   :  { %2150 = vmatpush3.bf16.msra.mxu1 %v2149_v23  ;;  %866 = vmatprep.mubr.f32.mxu1 %v31_v36  ;;  %v185_v23 = vld [vmem:[%s3803_s1 + $0x460] sm:$0xff]  ;;  %v188_v36 = vld [vmem:[%s3803_s1 + $0x478] sm:$0xff]  ;;  %v290_v5 = vld [vmem:[%s3803_s1 + $0x7a8] sm:$0xff] }
  0x48   :  { %2152 = vmatprep.subr.bf16.mxu1 %v2151_v28  ;;  %v203_v28 = vld [vmem:[%s3803_s1 + $0x4f0] sm:$0xff]  ;;  %v2141_v32 = vpack.c.bf16 %v186_v24, %v185_v23  ;;  %v289_v4 = vld [vmem:[%s3803_s1 + $0x7a0] sm:$0xff]  ;;  %v33_v6 = vld [vmem:[%s3804_s0 + $0x68] sm:$0xff] }
  0x49   :  { %2122 = vmatpush3.bf16.msra.mxu0 %v2121_v35  ;;  %v2143_v34 = vpack.c.bf16 %v204_v29, %v203_v28  ;;  %v187_v35 = vld [vmem:[%s3803_s1 + $0x470] sm:$0xff]  ;;  %v241_v11 = vld [vmem:[%s3803_s1 + $0x620] sm:$0xff]  ;;  %v242_v12 = vld [vmem:[%s3803_s1 + $0x628] sm:$0xff] }
  0x4a   :  { %2124 = vmatprep.subr.bf16.mxu0 %v2123_v38  ;;  %v2175_v38 = vpack.c.bf16 %v236_v31, %v235_v30  ;;  %v2145_v44 = vpack.c.bf16 %v188_v36, %v187_v35  ;;  %v273_v13 = vld [vmem:[%s3803_s1 + $0x720] sm:$0xff]  ;;  %v274_v15 = vld [vmem:[%s3803_s1 + $0x728] sm:$0xff]  ;;  %v259_v16 = vld [vmem:[%s3803_s1 + $0x6b0] sm:$0xff] }
  0x4b   :  { %2154 = vmatpush3.bf16.msra.mxu1 %v2153_v37  ;;  %v219_v37 = vld [vmem:[%s3803_s1 + $0x570] sm:$0xff]  ;;  %v260_v17 = vld [vmem:[%s3803_s1 + $0x6b8] sm:$0xff]  ;;  %v261_v28 = vld [vmem:[%s3803_s1 + $0x6c0] sm:$0xff] }
  0x4c   :  { %2156 = vmatprep.subr.bf16.mxu1 %v2155_v42  ;;  %v285_v42 = vld [vmem:[%s3803_s1 + $0x780] sm:$0xff]  ;;  %v2177_v45 = vpack.c.bf16 %v220_v39, %v219_v37  ;;  %v291_v18 = vld [vmem:[%s3803_s1 + $0x7b0] sm:$0xff]  ;;  %v292_v19 = vld [vmem:[%s3803_s1 + $0x7b8] sm:$0xff] }
  0x4d   :  { %2126 = vmatpush3.bf16.msra.mxu0 %v2125_v48  ;;  %v238_v48 = vld [vmem:[%s3803_s1 + $0x608] sm:$0xff]  ;;  %v243_v23 = vld [vmem:[%s3803_s1 + $0x630] sm:$0xff]  ;;  %v244_v24 = vld [vmem:[%s3803_s1 + $0x638] sm:$0xff] }
  0x4e   :  { %2128 = vmatprep.subr.bf16.mxu0 %v2127_v50  ;;  %v2211_v50 = vpack.c.bf16 %v286_v43, %v285_v42  ;;  %v2181_v57 = vpack.c.bf16 %v238_v48, %v237_v47  ;;  %v275_v25 = vld [vmem:[%s3803_s1 + $0x730] sm:$0xff]  ;;  %v276_v27 = vld [vmem:[%s3803_s1 + $0x738] sm:$0xff]  ;;  %v262_v29 = vld [vmem:[%s3803_s1 + $0x6c8] sm:$0xff] }
  0x4f   :  { %2158 = vmatpush3.bf16.msra.mxu1 %v2157_v49  ;;  %v269_v49 = vld [vmem:[%s3803_s1 + $0x700] sm:$0xff]  ;;  %v294_v31 = vld [vmem:[%s3803_s1 + $0x7c8] sm:$0xff]  ;;  %v263_v40 = vld [vmem:[%s3803_s1 + $0x6d0] sm:$0xff] }
  0x50   :  { %2160 = vmatprep.subr.bf16.mxu1 %v2159_v54  ;;  %v287_v54 = vld [vmem:[%s3803_s1 + $0x790] sm:$0xff]  ;;  %v2213_v59 = vpack.c.bf16 %v270_v51, %v269_v49  ;;  %v293_v30 = vld [vmem:[%s3803_s1 + $0x7c0] sm:$0xff]  ;;  %v246_v36 = vld [vmem:[%s3803_s1 + $0x648] sm:$0xff] }
  0x51   :  { %2130 = vmatpush3.bf16.msra.mxu0 %v2129_v60  ;;  %v2183_v60 = vpack.c.bf16 %v256_v53, %v255_v52  ;;  %v2215_v0 = vpack.c.bf16 %v288_v55, %v287_v54  ;;  %v245_v35 = vld [vmem:[%s3803_s1 + $0x640] sm:$0xff]  ;;  %v278_v39 = vld [vmem:[%s3803_s1 + $0x748] sm:$0xff]  ;;  %v264_v41 = vld [vmem:[%s3803_s1 + $0x6d8] sm:$0xff] }
  0x52   :  { %2132 = vmatprep.subr.bf16.mxu0 %v2131_v62  ;;  %v240_v62 = vld [vmem:[%s3803_s1 + $0x618] sm:$0xff]  ;;  %v277_v37 = vld [vmem:[%s3803_s1 + $0x740] sm:$0xff]  ;;  %v295_v42 = vld [vmem:[%s3803_s1 + $0x7d0] sm:$0xff] }
  0x53   :  { %2162 = vmatpush3.bf16.msra.mxu1 %v2161_v61  ;;  %v239_v61 = vld [vmem:[%s3803_s1 + $0x610] sm:$0xff]  ;;  %v296_v43 = vld [vmem:[%s3803_s1 + $0x7d8] sm:$0xff]  ;;  %v265_v52 = vld [vmem:[%s3803_s1 + $0x6e0] sm:$0xff] }
  0x54   :  { %2164 = vmatprep.subr.bf16.mxu1 %v2163_v2  ;;  %v257_v2 = vld [vmem:[%s3803_s1 + $0x6a0] sm:$0xff]  ;;  %v2185_v7 = vpack.c.bf16 %v240_v62, %v239_v61  ;;  %v247_v47 = vld [vmem:[%s3803_s1 + $0x650] sm:$0xff]  ;;  %v248_v48 = vld [vmem:[%s3803_s1 + $0x658] sm:$0xff] }
  0x55   :  { %2134 = vmatpush3.bf16.msra.mxu0 %v2133_v8  ;;  %v35_v8 = vld [vmem:[%s3804_s0 + $0x78] sm:$0xff]  ;;  %v279_v49 = vld [vmem:[%s3803_s1 + $0x750] sm:$0xff]  ;;  %v266_v53 = vld [vmem:[%s3803_s1 + $0x6e8] sm:$0xff] }
  0x56   :  { %2136 = vmatprep.subr.bf16.mxu0 %v2135_v10  ;;  %v2187_v10 = vpack.c.bf16 %v258_v3, %v257_v2  ;;  %v280_v51 = vld [vmem:[%s3803_s1 + $0x758] sm:$0xff]  ;;  %v297_v54 = vld [vmem:[%s3803_s1 + $0x7e0] sm:$0xff]  ;;  %v298_v55 = vld [vmem:[%s3803_s1 + $0x7e8] sm:$0xff] }
  0x57   :  { %2166 = vmatpush3.bf16.msra.mxu1 %v2165_v9  ;;  %v2217_v9 = vpack.c.bf16 %v272_v1, %v271_v63  ;;  %v281_v61 = vld [vmem:[%s3803_s1 + $0x760] sm:$0xff]  ;;  %v2235_v62 = vpack.c.bf16 %v298_v55, %v297_v54  ;;  %v282_v63 = vld [vmem:[%s3803_s1 + $0x768] sm:$0xff]  ;;  %v268_v1 = vld [vmem:[%s3803_s1 + $0x6f8] sm:$0xff] }
  0x58   :  { %2168 = vmatprep.subr.bf16.mxu1 %v2167_v14  ;;  %v2219_v14 = vpack.c.bf16 %v290_v5, %v289_v4  ;;  %v299_v2 = vld [vmem:[%s3803_s1 + $0x7f0] sm:$0xff]  ;;  %v300_v3 = vld [vmem:[%s3803_s1 + $0x7f8] sm:$0xff]  ;;  %v2237_v5 = vpack.c.bf16 %v282_v63, %v281_v61 }
  0x59   :  { %2138 = vmatpush3.bf16.msra.mxu0 %v2137_v20  ;;  %v2189_v20 = vpack.c.bf16 %v242_v12, %v241_v11  ;;  %v284_v11 = vld [vmem:[%s3803_s1 + $0x778] sm:$0xff]  ;;  %v317_v12 = vld [vmem:[%s3803_s1 + $0x880] sm:$0xff]  ;;  %v355_v54 = vld [vmem:[%s3803_s1 + $0x9b0] sm:$0xff] }
  0x5a   :  { %2140 = vmatprep.subr.bf16.mxu0 %v2139_v22  ;;  %v2191_v22 = vpack.c.bf16 %v260_v17, %v259_v16  ;;  %v356_v55 = vld [vmem:[%s3803_s1 + $0x9b8] sm:$0xff]  ;;  %v339_v61 = vld [vmem:[%s3803_s1 + $0x930] sm:$0xff] }
  0x5b   :  { %2170 = vmatpush3.bf16.msra.mxu1 %v2169_v21  ;;  %v2221_v21 = vpack.c.bf16 %v274_v15, %v273_v13  ;;  %v318_v13 = vld [vmem:[%s3803_s1 + $0x888] sm:$0xff]  ;;  %v340_v63 = vld [vmem:[%s3803_s1 + $0x938] sm:$0xff] }
  0x5c   :  { %2172 = vmatprep.subr.bf16.mxu1 %v2171_v26  ;;  %v2223_v26 = vpack.c.bf16 %v292_v19, %v291_v18  ;;  %v350_v15 = vld [vmem:[%s3803_s1 + $0x988] sm:$0xff]  ;;  %v2243_v18 = vpack.c.bf16 %v318_v13, %v317_v12  ;;  %v301_v19 = vld [vmem:[%s3803_s1 + $0x800] sm:$0xff]  ;;  %v327_v12 = vld [vmem:[%s3803_s1 + $0x8d0] sm:$0xff] }
  0x5d   :  { %2142 = vmatpush3.bf16.msra.mxu0 %v2141_v32  ;;  %v2193_v32 = vpack.c.bf16 %v244_v24, %v243_v23  ;;  %v334_v23 = vld [vmem:[%s3803_s1 + $0x908] sm:$0xff]  ;;  %v319_v24 = vld [vmem:[%s3803_s1 + $0x890] sm:$0xff]  ;;  %v328_v13 = vld [vmem:[%s3803_s1 + $0x8d8] sm:$0xff] }
  0x5e   :  { %2144 = vmatprep.subr.bf16.mxu0 %v2143_v34  ;;  %v2195_v34 = vpack.c.bf16 %v262_v29, %v261_v28  ;;  %v32_v28 = vld [vmem:[%s3804_s0 + $0x60] sm:$0xff] }
  0x5f   :  { %2174 = vmatpush3.bf16.msra.mxu1 %v2173_v33  ;;  %v2225_v33 = vpack.c.bf16 %v276_v27, %v275_v25  ;;  %v320_v25 = vld [vmem:[%s3803_s1 + $0x898] sm:$0xff] }
  0x60   :  { %2176 = vmatprep.subr.bf16.mxu1 %v2175_v38  ;;  %v2227_v38 = vpack.c.bf16 %v294_v31, %v293_v30  ;;  %v352_v27 = vld [vmem:[%s3803_s1 + $0x998] sm:$0xff]  ;;  %v34_v30 = vld [vmem:[%s3804_s0 + $0x70] sm:$0xff] }
  0x61   :  { %2146 = vmatpush3.bf16.msra.mxu0 %v2145_v44  ;;  %v2197_v44 = vpack.c.bf16 %v246_v36, %v245_v35  ;;  %v335_v35 = vld [vmem:[%s3803_s1 + $0x910] sm:$0xff] }
  0x62   :  { %2180 = vmatprep.subr.bf16.mxu0 %v2179_v46  ;;  %v2199_v46 = vpack.c.bf16 %v264_v41, %v263_v40  ;;  %v353_v40 = vld [vmem:[%s3803_s1 + $0x9a0] sm:$0xff]  ;;  %v354_v41 = vld [vmem:[%s3803_s1 + $0x9a8] sm:$0xff] }
  0x63   :  { %2178 = vmatpush3.bf16.msra.mxu1 %v2177_v45  ;;  %v2229_v45 = vpack.c.bf16 %v278_v39, %v277_v37  ;;  %v336_v37 = vld [vmem:[%s3803_s1 + $0x918] sm:$0xff]  ;;  %v322_v39 = vld [vmem:[%s3803_s1 + $0x8a8] sm:$0xff] }
  0x64   :  { %2212 = vmatprep.subr.bf16.mxu1 %v2211_v50  ;;  %797 = vmatmul.mubr.f32.vlgmr.msra.gmra.mrb[4].mxu0 %v28_v56  ;;  %v2231_v50 = vpack.c.bf16 %v296_v43, %v295_v42  ;;  %v2201_v56 = vpack.c.bf16 %v248_v48, %v247_v47  ;;  %v37_v42 = vld [vmem:[%s3804_s0 + $0x88] sm:$0xff]  ;;  %v305_v47 = vld [vmem:[%s3803_s1 + $0x820] sm:$0xff] }
  0x65   :  { %2182 = vmatpush3.bf16.msra.mxu0 %v2181_v57  ;;  %936 = vmatprep.mubr.f32.mxu0 %v33_v6  ;;  %v2233_v57 = vpack.c.bf16 %v280_v51, %v279_v49  ;;  %v306_v48 = vld [vmem:[%s3803_s1 + $0x828] sm:$0xff]  ;;  %v337_v49 = vld [vmem:[%s3803_s1 + $0x920] sm:$0xff] }
  0x66   :  { %867 = vmatmul.mubr.f32.vlgmr.msra.gmra.mrb[4].mxu1 %v30_v58  ;;  %2184 = vmatprep.subr.bf16.mxu0 %v2183_v60  ;;  %v2203_v58 = vpack.c.bf16 %v266_v53, %v265_v52  ;;  %v250_v60 = vld [vmem:[%s3803_s1 + $0x668] sm:$0xff]  ;;  %v323_v52 = vld [vmem:[%s3803_s1 + $0x8b0] sm:$0xff]  ;;  %v324_v53 = vld [vmem:[%s3803_s1 + $0x8b8] sm:$0xff] }
  0x67   :  { %2214 = vmatpush3.bf16.msra.mxu1 %v2213_v59  ;;  %1006 = vmatprep.mubr.f32.mxu1 %v35_v8  ;;  %v249_v59 = vld [vmem:[%s3803_s1 + $0x660] sm:$0xff]  ;;  %v252_v8 = vld [vmem:[%s3803_s1 + $0x678] sm:$0xff]  ;;  %v338_v51 = vld [vmem:[%s3803_s1 + $0x928] sm:$0xff] }
  0x68   :  { %2216 = vmatprep.subr.bf16.mxu1 %v2215_v0  ;;  %v267_v0 = vld [vmem:[%s3803_s1 + $0x6f0] sm:$0xff]  ;;  %v2205_v4 = vpack.c.bf16 %v250_v60, %v249_v59  ;;  %v308_v60 = vld [vmem:[%s3803_s1 + $0x838] sm:$0xff] }
  0x69   :  { %2186 = vmatpush3.bf16.msra.mxu0 %v2185_v7  ;;  %v2207_v6 = vpack.c.bf16 %v268_v1, %v267_v0  ;;  %v251_v7 = vld [vmem:[%s3803_s1 + $0x670] sm:$0xff]  ;;  %v325_v0 = vld [vmem:[%s3803_s1 + $0x8c0] sm:$0xff]  ;;  %v326_v1 = vld [vmem:[%s3803_s1 + $0x8c8] sm:$0xff] }
  0x6a   :  { %2188 = vmatprep.subr.bf16.mxu0 %v2187_v10  ;;  %v2239_v10 = vpack.c.bf16 %v300_v3, %v299_v2  ;;  %v2209_v16 = vpack.c.bf16 %v252_v8, %v251_v7  ;;  %v307_v59 = vld [vmem:[%s3803_s1 + $0x830] sm:$0xff]  ;;  %v357_v2 = vld [vmem:[%s3803_s1 + $0x9c0] sm:$0xff]  ;;  %v358_v3 = vld [vmem:[%s3803_s1 + $0x9c8] sm:$0xff] }
  0x6b   :  { %2218 = vmatpush3.bf16.msra.mxu1 %v2217_v9  ;;  %v283_v9 = vld [vmem:[%s3803_s1 + $0x770] sm:$0xff]  ;;  %v309_v7 = vld [vmem:[%s3803_s1 + $0x840] sm:$0xff]  ;;  %v310_v8 = vld [vmem:[%s3803_s1 + $0x848] sm:$0xff] }
  0x6c   :  { %2220 = vmatprep.subr.bf16.mxu1 %v2219_v14  ;;  %v349_v14 = vld [vmem:[%s3803_s1 + $0x980] sm:$0xff]  ;;  %v2241_v17 = vpack.c.bf16 %v284_v11, %v283_v9  ;;  %v342_v11 = vld [vmem:[%s3803_s1 + $0x948] sm:$0xff] }
  0x6d   :  { %2190 = vmatpush3.bf16.msra.mxu0 %v2189_v20  ;;  %v302_v20 = vld [vmem:[%s3803_s1 + $0x808] sm:$0xff]  ;;  %v341_v9 = vld [vmem:[%s3803_s1 + $0x940] sm:$0xff] }
  0x6e   :  { %2192 = vmatprep.subr.bf16.mxu0 %v2191_v22  ;;  %v2275_v22 = vpack.c.bf16 %v350_v15, %v349_v14  ;;  %v2245_v29 = vpack.c.bf16 %v302_v20, %v301_v19  ;;  %v359_v14 = vld [vmem:[%s3803_s1 + $0x9d0] sm:$0xff]  ;;  %v360_v15 = vld [vmem:[%s3803_s1 + $0x9d8] sm:$0xff] }
  0x6f   :  { %2222 = vmatpush3.bf16.msra.mxu1 %v2221_v21  ;;  %v333_v21 = vld [vmem:[%s3803_s1 + $0x900] sm:$0xff]  ;;  %v311_v19 = vld [vmem:[%s3803_s1 + $0x850] sm:$0xff]  ;;  %v312_v20 = vld [vmem:[%s3803_s1 + $0x858] sm:$0xff] }
  0x70   :  { %2224 = vmatprep.subr.bf16.mxu1 %v2223_v26  ;;  %v351_v26 = vld [vmem:[%s3803_s1 + $0x990] sm:$0xff]  ;;  %v2277_v31 = vpack.c.bf16 %v334_v23, %v333_v21  ;;  %v344_v23 = vld [vmem:[%s3803_s1 + $0x958] sm:$0xff] }
  0x71   :  { %2194 = vmatpush3.bf16.msra.mxu0 %v2193_v32  ;;  %v2247_v32 = vpack.c.bf16 %v320_v25, %v319_v24  ;;  %v2279_v36 = vpack.c.bf16 %v352_v27, %v351_v26  ;;  %v343_v21 = vld [vmem:[%s3803_s1 + $0x950] sm:$0xff]  ;;  %v329_v24 = vld [vmem:[%s3803_s1 + $0x8e0] sm:$0xff]  ;;  %v330_v25 = vld [vmem:[%s3803_s1 + $0x8e8] sm:$0xff] }
  0x72   :  { %2196 = vmatprep.subr.bf16.mxu0 %v2195_v34  ;;  %v304_v34 = vld [vmem:[%s3803_s1 + $0x818] sm:$0xff]  ;;  %v361_v26 = vld [vmem:[%s3803_s1 + $0x9e0] sm:$0xff]  ;;  %v362_v27 = vld [vmem:[%s3803_s1 + $0x9e8] sm:$0xff] }
  0x73   :  { %2226 = vmatpush3.bf16.msra.mxu1 %v2225_v33  ;;  %v303_v33 = vld [vmem:[%s3803_s1 + $0x810] sm:$0xff] }
  0x74   :  { %2228 = vmatprep.subr.bf16.mxu1 %v2227_v38  ;;  %v321_v38 = vld [vmem:[%s3803_s1 + $0x8a0] sm:$0xff]  ;;  %v2249_v43 = vpack.c.bf16 %v304_v34, %v303_v33  ;;  %v2299_v34 = vpack.c.bf16 %v362_v27, %v361_v26  ;;  %v419_v26 = vld [vmem:[%s3803_s1 + $0xbb0] sm:$0xff]  ;;  %v420_v27 = vld [vmem:[%s3803_s1 + $0xbb8] sm:$0xff] }
  0x75   :  { %2198 = vmatpush3.bf16.msra.mxu0 %v2197_v44  ;;  %v39_v44 = vld [vmem:[%s3804_s0 + $0x98] sm:$0xff]  ;;  %v345_v33 = vld [vmem:[%s3803_s1 + $0x960] sm:$0xff] }
  0x76   :  { %2200 = vmatprep.subr.bf16.mxu0 %v2199_v46  ;;  %v2251_v46 = vpack.c.bf16 %v322_v39, %v321_v38  ;;  %v363_v38 = vld [vmem:[%s3803_s1 + $0x9f0] sm:$0xff]  ;;  %v364_v39 = vld [vmem:[%s3803_s1 + $0x9f8] sm:$0xff] }
  0x77   :  { %2230 = vmatpush3.bf16.msra.mxu1 %v2229_v45  ;;  %v2281_v45 = vpack.c.bf16 %v336_v37, %v335_v35  ;;  %v346_v35 = vld [vmem:[%s3803_s1 + $0x968] sm:$0xff]  ;;  %v332_v37 = vld [vmem:[%s3803_s1 + $0x8f8] sm:$0xff] }
  0x78   :  { %2232 = vmatprep.subr.bf16.mxu1 %v2231_v50  ;;  %v2283_v50 = vpack.c.bf16 %v354_v41, %v353_v40  ;;  %v2301_v41 = vpack.c.bf16 %v346_v35, %v345_v33  ;;  %v403_v33 = vld [vmem:[%s3803_s1 + $0xb30] sm:$0xff]  ;;  %v404_v35 = vld [vmem:[%s3803_s1 + $0xb38] sm:$0xff] }
  0x79   :  { %2202 = vmatpush3.bf16.msra.mxu0 %v2201_v56  ;;  %v2253_v56 = vpack.c.bf16 %v306_v48, %v305_v47  ;;  %v348_v47 = vld [vmem:[%s3803_s1 + $0x978] sm:$0xff]  ;;  %v381_v48 = vld [vmem:[%s3803_s1 + $0xa80] sm:$0xff] }
  0x7a   :  { %2204 = vmatprep.subr.bf16.mxu0 %v2203_v58  ;;  %v2255_v58 = vpack.c.bf16 %v324_v53, %v323_v52 }
  0x7b   :  { %2234 = vmatpush3.bf16.msra.mxu1 %v2233_v57  ;;  %v2285_v57 = vpack.c.bf16 %v338_v51, %v337_v49  ;;  %v382_v49 = vld [vmem:[%s3803_s1 + $0xa88] sm:$0xff] }
  0x7c   :  { %2236 = vmatprep.subr.bf16.mxu1 %v2235_v62  ;;  %v2287_v62 = vpack.c.bf16 %v356_v55, %v355_v54  ;;  %v414_v51 = vld [vmem:[%s3803_s1 + $0xb88] sm:$0xff]  ;;  %v2307_v54 = vpack.c.bf16 %v382_v49, %v381_v48  ;;  %v365_v55 = vld [vmem:[%s3803_s1 + $0xa00] sm:$0xff]  ;;  %v391_v48 = vld [vmem:[%s3803_s1 + $0xad0] sm:$0xff] }
  0x7d   :  { %2206 = vmatpush3.bf16.msra.mxu0 %v2205_v4  ;;  %v2257_v4 = vpack.c.bf16 %v308_v60, %v307_v59  ;;  %v398_v59 = vld [vmem:[%s3803_s1 + $0xb08] sm:$0xff]  ;;  %v383_v60 = vld [vmem:[%s3803_s1 + $0xa90] sm:$0xff]  ;;  %v392_v49 = vld [vmem:[%s3803_s1 + $0xad8] sm:$0xff] }
  0x7e   :  { %2208 = vmatprep.subr.bf16.mxu0 %v2207_v6  ;;  %v2259_v6 = vpack.c.bf16 %v326_v1, %v325_v0  ;;  %v36_v0 = vld [vmem:[%s3804_s0 + $0x80] sm:$0xff] }
  0x7f   :  { %2238 = vmatpush3.bf16.msra.mxu1 %v2237_v5  ;;  %v2289_v5 = vpack.c.bf16 %v340_v63, %v339_v61  ;;  %v384_v61 = vld [vmem:[%s3803_s1 + $0xa98] sm:$0xff] }
  0x80   :  { %2240 = vmatprep.subr.bf16.mxu1 %v2239_v10  ;;  %v2291_v10 = vpack.c.bf16 %v358_v3, %v357_v2  ;;  %v416_v63 = vld [vmem:[%s3803_s1 + $0xb98] sm:$0xff]  ;;  %v38_v2 = vld [vmem:[%s3804_s0 + $0x90] sm:$0xff] }
  0x81   :  { %2210 = vmatpush3.bf16.msra.mxu0 %v2209_v16  ;;  %v2261_v16 = vpack.c.bf16 %v310_v8, %v309_v7  ;;  %v399_v7 = vld [vmem:[%s3803_s1 + $0xb10] sm:$0xff] }
  0x82   :  { %2244 = vmatprep.subr.bf16.mxu0 %v2243_v18  ;;  %v2263_v18 = vpack.c.bf16 %v328_v13, %v327_v12  ;;  %v417_v12 = vld [vmem:[%s3803_s1 + $0xba0] sm:$0xff]  ;;  %v418_v13 = vld [vmem:[%s3803_s1 + $0xba8] sm:$0xff] }
  0x83   :  { %2242 = vmatpush3.bf16.msra.mxu1 %v2241_v17  ;;  %v2293_v17 = vpack.c.bf16 %v342_v11, %v341_v9  ;;  %v400_v9 = vld [vmem:[%s3803_s1 + $0xb18] sm:$0xff]  ;;  %v386_v11 = vld [vmem:[%s3803_s1 + $0xaa8] sm:$0xff] }
  0x84   :  { %2276 = vmatprep.subr.bf16.mxu1 %v2275_v22  ;;  %937 = vmatmul.mubr.f32.vlgmr.msra.gmra.mrb[6].mxu0 %v32_v28  ;;  %v2295_v22 = vpack.c.bf16 %v360_v15, %v359_v14  ;;  %v2265_v28 = vpack.c.bf16 %v312_v20, %v311_v19  ;;  %v41_v14 = vld [vmem:[%s3804_s0 + $0xa8] sm:$0xff]  ;;  %v369_v19 = vld [vmem:[%s3803_s1 + $0xa20] sm:$0xff] }
  0x85   :  { %2246 = vmatpush3.bf16.msra.mxu0 %v2245_v29  ;;  %1076 = vmatprep.mubr.f32.mxu0 %v37_v42  ;;  %v2297_v29 = vpack.c.bf16 %v344_v23, %v343_v21  ;;  %v370_v20 = vld [vmem:[%s3803_s1 + $0xa28] sm:$0xff]  ;;  %v401_v21 = vld [vmem:[%s3803_s1 + $0xb20] sm:$0xff] }
  0x86   :  { %1007 = vmatmul.mubr.f32.vlgmr.msra.gmra.mrb[6].mxu1 %v34_v30  ;;  %2248 = vmatprep.subr.bf16.mxu0 %v2247_v32  ;;  %v2267_v30 = vpack.c.bf16 %v330_v25, %v329_v24  ;;  %v314_v32 = vld [vmem:[%s3803_s1 + $0x868] sm:$0xff]  ;;  %v387_v24 = vld [vmem:[%s3803_s1 + $0xab0] sm:$0xff]  ;;  %v388_v25 = vld [vmem:[%s3803_s1 + $0xab8] sm:$0xff] }
  0x87   :  { %2278 = vmatpush3.bf16.msra.mxu1 %v2277_v31  ;;  %1146 = vmatprep.mubr.f32.mxu1 %v39_v44  ;;  %v313_v31 = vld [vmem:[%s3803_s1 + $0x860] sm:$0xff]  ;;  %v316_v44 = vld [vmem:[%s3803_s1 + $0x878] sm:$0xff]  ;;  %v402_v23 = vld [vmem:[%s3803_s1 + $0xb28] sm:$0xff] }
  0x88   :  { %2280 = vmatprep.subr.bf16.mxu1 %v2279_v36  ;;  %v331_v36 = vld [vmem:[%s3803_s1 + $0x8f0] sm:$0xff]  ;;  %v2269_v40 = vpack.c.bf16 %v314_v32, %v313_v31  ;;  %v372_v32 = vld [vmem:[%s3803_s1 + $0xa38] sm:$0xff] }
  0x89   :  { %2250 = vmatpush3.bf16.msra.mxu0 %v2249_v43  ;;  %v2271_v42 = vpack.c.bf16 %v332_v37, %v331_v36  ;;  %v315_v43 = vld [vmem:[%s3803_s1 + $0x870] sm:$0xff]  ;;  %v389_v36 = vld [vmem:[%s3803_s1 + $0xac0] sm:$0xff]  ;;  %v390_v37 = vld [vmem:[%s3803_s1 + $0xac8] sm:$0xff] }
  0x8a   :  { %2252 = vmatprep.subr.bf16.mxu0 %v2251_v46  ;;  %v2303_v46 = vpack.c.bf16 %v364_v39, %v363_v38  ;;  %v2273_v52 = vpack.c.bf16 %v316_v44, %v315_v43  ;;  %v371_v31 = vld [vmem:[%s3803_s1 + $0xa30] sm:$0xff]  ;;  %v421_v38 = vld [vmem:[%s3803_s1 + $0xbc0] sm:$0xff]  ;;  %v422_v39 = vld [vmem:[%s3803_s1 + $0xbc8] sm:$0xff] }
  0x8b   :  { %2282 = vmatpush3.bf16.msra.mxu1 %v2281_v45  ;;  %v347_v45 = vld [vmem:[%s3803_s1 + $0x970] sm:$0xff]  ;;  %v373_v43 = vld [vmem:[%s3803_s1 + $0xa40] sm:$0xff]  ;;  %v374_v44 = vld [vmem:[%s3803_s1 + $0xa48] sm:$0xff] }
  0x8c   :  { %2284 = vmatprep.subr.bf16.mxu1 %v2283_v50  ;;  %v413_v50 = vld [vmem:[%s3803_s1 + $0xb80] sm:$0xff]  ;;  %v2305_v53 = vpack.c.bf16 %v348_v47, %v347_v45  ;;  %v406_v47 = vld [vmem:[%s3803_s1 + $0xb48] sm:$0xff] }
  0x8d   :  { %2254 = vmatpush3.bf16.msra.mxu0 %v2253_v56  ;;  %v366_v56 = vld [vmem:[%s3803_s1 + $0xa08] sm:$0xff]  ;;  %v405_v45 = vld [vmem:[%s3803_s1 + $0xb40] sm:$0xff] }
  0x8e   :  { %2256 = vmatprep.subr.bf16.mxu0 %v2255_v58  ;;  %v2339_v58 = vpack.c.bf16 %v414_v51, %v413_v50  ;;  %v2309_v1 = vpack.c.bf16 %v366_v56, %v365_v55  ;;  %v423_v50 = vld [vmem:[%s3803_s1 + $0xbd0] sm:$0xff]  ;;  %v424_v51 = vld [vmem:[%s3803_s1 + $0xbd8] sm:$0xff] }
  0x8f   :  { %2286 = vmatpush3.bf16.msra.mxu1 %v2285_v57  ;;  %v397_v57 = vld [vmem:[%s3803_s1 + $0xb00] sm:$0xff]  ;;  %v375_v55 = vld [vmem:[%s3803_s1 + $0xa50] sm:$0xff]  ;;  %v376_v56 = vld [vmem:[%s3803_s1 + $0xa58] sm:$0xff] }
  0x90   :  { %2288 = vmatprep.subr.bf16.mxu1 %v2287_v62  ;;  %v415_v62 = vld [vmem:[%s3803_s1 + $0xb90] sm:$0xff]  ;;  %v2341_v3 = vpack.c.bf16 %v398_v59, %v397_v57  ;;  %v408_v59 = vld [vmem:[%s3803_s1 + $0xb58] sm:$0xff] }
  0x91   :  { %2258 = vmatpush3.bf16.msra.mxu0 %v2257_v4  ;;  %v2311_v4 = vpack.c.bf16 %v384_v61, %v383_v60  ;;  %v2343_v8 = vpack.c.bf16 %v416_v63, %v415_v62  ;;  %v407_v57 = vld [vmem:[%s3803_s1 + $0xb50] sm:$0xff]  ;;  %v393_v60 = vld [vmem:[%s3803_s1 + $0xae0] sm:$0xff]  ;;  %v394_v61 = vld [vmem:[%s3803_s1 + $0xae8] sm:$0xff] }
  0x92   :  { %2260 = vmatprep.subr.bf16.mxu0 %v2259_v6  ;;  %v368_v6 = vld [vmem:[%s3803_s1 + $0xa18] sm:$0xff]  ;;  %v425_v62 = vld [vmem:[%s3803_s1 + $0xbe0] sm:$0xff]  ;;  %v426_v63 = vld [vmem:[%s3803_s1 + $0xbe8] sm:$0xff] }
  0x93   :  { %2290 = vmatpush3.bf16.msra.mxu1 %v2289_v5  ;;  %v367_v5 = vld [vmem:[%s3803_s1 + $0xa10] sm:$0xff] }
  0x94   :  { %2292 = vmatprep.subr.bf16.mxu1 %v2291_v10  ;;  %v385_v10 = vld [vmem:[%s3803_s1 + $0xaa0] sm:$0xff]  ;;  %v2313_v15 = vpack.c.bf16 %v368_v6, %v367_v5  ;;  %v2363_v6 = vpack.c.bf16 %v426_v63, %v425_v62 }
  0x95   :  { %2262 = vmatpush3.bf16.msra.mxu0 %v2261_v16  ;;  %v43_v16 = vld [vmem:[%s3804_s0 + $0xb8] sm:$0xff]  ;;  %v409_v5 = vld [vmem:[%s3803_s1 + $0xb60] sm:$0xff] }
  0x96   :  { %2264 = vmatprep.subr.bf16.mxu0 %v2263_v18  ;;  %v2315_v18 = vpack.c.bf16 %v386_v11, %v385_v10  ;;  %v427_v10 = vld [vmem:[%s3803_s1 + $0xbf0] sm:$0xff]  ;;  %v428_v11 = vld [vmem:[%s3803_s1 + $0xbf8] sm:$0xff] }
  0x97   :  { %2294 = vmatpush3.bf16.msra.mxu1 %v2293_v17  ;;  %v2345_v17 = vpack.c.bf16 %v400_v9, %v399_v7  ;;  %v410_v7 = vld [vmem:[%s3803_s1 + $0xb68] sm:$0xff]  ;;  %v396_v9 = vld [vmem:[%s3803_s1 + $0xaf8] sm:$0xff] }
  0x98   :  { %2296 = vmatprep.subr.bf16.mxu1 %v2295_v22  ;;  %v2347_v22 = vpack.c.bf16 %v418_v13, %v417_v12  ;;  %v2365_v13 = vpack.c.bf16 %v410_v7, %v409_v5  ;;  %v1366_v7 = vld [vmem:[%s3806_s3 + $0x18] sm:$0xff] }
  0x99   :  { %2266 = vmatpush3.bf16.msra.mxu0 %v2265_v28  ;;  %v2317_v28 = vpack.c.bf16 %v370_v20, %v369_v19  ;;  %v412_v19 = vld [vmem:[%s3803_s1 + $0xb78] sm:$0xff] }
  0x9a   :  { %2268 = vmatprep.subr.bf16.mxu0 %v2267_v30  ;;  %v2319_v30 = vpack.c.bf16 %v388_v25, %v387_v24  ;;  %v40_v24 = vld [vmem:[%s3804_s0 + $0xa0] sm:$0xff] }
  0x9b   :  { %2298 = vmatpush3.bf16.msra.mxu1 %v2297_v29  ;;  %v2349_v29 = vpack.c.bf16 %v402_v23, %v401_v21  ;;  %v430_v23 = vld [vmem:[%s3803_s1 + $0xc08] sm:$0xff] }
  0x9c   :  { %2300 = vmatprep.subr.bf16.mxu1 %v2299_v34  ;;  %v2351_v34 = vpack.c.bf16 %v420_v27, %v419_v26  ;;  %v2422_v26 = vmov 0.0|0.0   ;;  %v42_v27 = vld [vmem:[%s3804_s0 + $0xb0] sm:$0xff] }
  0x9d   :  { %2270 = vmatpush3.bf16.msra.mxu0 %v2269_v40  ;;  %v2321_v40 = vpack.c.bf16 %v372_v32, %v371_v31  ;;  %v433_v31 = vld [vmem:[%s3803_s1 + $0xc20] sm:$0xff]  ;;  %v434_v32 = vld [vmem:[%s3803_s1 + $0xc28] sm:$0xff] }
  0x9e   :  { %2272 = vmatprep.subr.bf16.mxu0 %v2271_v42  ;;  %v2323_v42 = vpack.c.bf16 %v390_v37, %v389_v36  ;;  %v436_v36 = vld [vmem:[%s3803_s1 + $0xc38] sm:$0xff] }
  0x9f   :  { %2302 = vmatpush3.bf16.msra.mxu1 %v2301_v41  ;;  %v2353_v41 = vpack.c.bf16 %v404_v35, %v403_v33  ;;  %v2424_v33 = vmov 0.0   ;;  %v435_v35 = vld [vmem:[%s3803_s1 + $0xc30] sm:$0xff] }
  0xa0   :  { %2304 = vmatprep.subr.bf16.mxu1 %v2303_v46  ;;  %v2355_v46 = vpack.c.bf16 %v422_v39, %v421_v38  ;;  %v2381_v37 = vpack.c.bf16 %v436_v36, %v435_v35  ;;  %v437_v38 = vld [vmem:[%s3803_s1 + $0xc40] sm:$0xff]  ;;  %v438_v39 = vld [vmem:[%s3803_s1 + $0xc48] sm:$0xff] }
  0xa1   :  { %2274 = vmatpush3.bf16.msra.mxu0 %v2273_v52  ;;  %v2325_v52 = vpack.c.bf16 %v374_v44, %v373_v43  ;;  %v441_v44 = vld [vmem:[%s3803_s1 + $0xc60] sm:$0xff] }
  0xa2   :  { %2308 = vmatprep.subr.bf16.mxu0 %v2307_v54  ;;  %v2327_v54 = vpack.c.bf16 %v392_v49, %v391_v48  ;;  %v444_v48 = vld [vmem:[%s3803_s1 + $0xc78] sm:$0xff] }
  0xa3   :  { %2306 = vmatpush3.bf16.msra.mxu1 %v2305_v53  ;;  %v2357_v53 = vpack.c.bf16 %v406_v47, %v405_v45  ;;  %v442_v45 = vld [vmem:[%s3803_s1 + $0xc68] sm:$0xff]  ;;  %v443_v47 = vld [vmem:[%s3803_s1 + $0xc70] sm:$0xff] }
  0xa4   :  { %2340 = vmatprep.subr.bf16.mxu1 %v2339_v58  ;;  %1077 = vmatmul.mubr.f32.vlgmr.msra.gmra.mrb[8].mxu0 %v36_v0  ;;  %v2359_v58 = vpack.c.bf16 %v424_v51, %v423_v50  ;;  %v2329_v0 = vpack.c.bf16 %v376_v56, %v375_v55  ;;  %v2393_v49 = vpack.c.bf16 %v444_v48, %v443_v47  ;;  %v44_v50 = vld [vmem:[%s3804_s0 + $0xc0] sm:$0xff] }
  0xa5   :  { %2310 = vmatpush3.bf16.msra.mxu0 %v2309_v1  ;;  %1216 = vmatprep.mubr.f32.mxu0 %v41_v14  ;;  %v2361_v1 = vpack.c.bf16 %v408_v59, %v407_v57 }
  0xa6   :  { %1147 = vmatmul.mubr.f32.vlgmr.msra.gmra.mrb[8].mxu1 %v38_v2  ;;  %2312 = vmatprep.subr.bf16.mxu0 %v2311_v4  ;;  %v2331_v2 = vpack.c.bf16 %v394_v61, %v393_v60  ;;  %v378_v4 = vld [vmem:[%s3803_s1 + $0xa68] sm:$0xff] }
  0xa7   :  { %2342 = vmatpush3.bf16.msra.mxu1 %v2341_v3  ;;  %1286 = vmatprep.mubr.f32.mxu1 %v43_v16  ;;  %v377_v3 = vld [vmem:[%s3803_s1 + $0xa60] sm:$0xff]  ;;  %v380_v16 = vld [vmem:[%s3803_s1 + $0xa78] sm:$0xff] }
  0xa8   :  { %2344 = vmatprep.subr.bf16.mxu1 %v2343_v8  ;;  %v395_v8 = vld [vmem:[%s3803_s1 + $0xaf0] sm:$0xff]  ;;  %v2333_v12 = vpack.c.bf16 %v378_v4, %v377_v3  ;;  %v1364_v3 = vld [vmem:[%s3806_s3 + $0x8] sm:$0xff] }
  0xa9   :  { %2314 = vmatpush3.bf16.msra.mxu0 %v2313_v15  ;;  %v2335_v14 = vpack.c.bf16 %v396_v9, %v395_v8  ;;  %v379_v15 = vld [vmem:[%s3803_s1 + $0xa70] sm:$0xff] }
  0xaa   :  { %2316 = vmatprep.subr.bf16.mxu0 %v2315_v18  ;;  %v411_v18 = vld [vmem:[%s3803_s1 + $0xb70] sm:$0xff]  ;;  %v2337_v20 = vpack.c.bf16 %v380_v16, %v379_v15  ;;  %v1371_v16 = vld [vmem:[%s3806_s3 + $0x40] sm:$0xff] }
  0xab   :  { %2346 = vmatpush3.bf16.msra.mxu1 %v2345_v17  ;;  %v2367_v17 = vpack.c.bf16 %v428_v11, %v427_v10  ;;  %v2369_v21 = vpack.c.bf16 %v412_v19, %v411_v18  ;;  %v1367_v10 = vld [vmem:[%s3806_s3 + $0x20] sm:$0xff]  ;;  %v1368_v11 = vld [vmem:[%s3806_s3 + $0x28] sm:$0xff]  ;;  %v1373_v19 = vld [vmem:[%s3806_s3 + $0x50] sm:$0xff] }
  0xac   :  { %2348 = vmatprep.subr.bf16.mxu1 %v2347_v22  ;;  %v429_v22 = vld [vmem:[%s3803_s1 + $0xc00] sm:$0xff] }
  0xad   :  { %2318 = vmatpush3.bf16.msra.mxu0 %v2317_v28  ;;  %v2372_v25 = vpack.c.bf16 %v430_v23, %v429_v22  ;;  %v431_v28 = vld [vmem:[%s3803_s1 + $0xc10] sm:$0xff]  ;;  %v1375_v22 = vld [vmem:[%s3806_s3 + $0x60] sm:$0xff]  ;;  %v1376_v23 = vld [vmem:[%s3806_s3 + $0x68] sm:$0xff] }
  0xae   :  { %2320 = vmatprep.subr.bf16.mxu0 %v2319_v30 }
  0xaf   :  { %2350 = vmatpush3.bf16.msra.mxu1 %v2349_v29  ;;  %v432_v29 = vld [vmem:[%s3803_s1 + $0xc18] sm:$0xff] }
  0xb0   :  { %2352 = vmatprep.subr.bf16.mxu1 %v2351_v34  ;;  %v2375_v30 = vpack.c.bf16 %v432_v29, %v431_v28  ;;  %v2378_v34 = vpack.c.bf16 %v434_v32, %v433_v31 }
  0xb1   :  { %2322 = vmatpush3.bf16.msra.mxu0 %v2321_v40  ;;  %v2384_v40 = vpack.c.bf16 %v438_v39, %v437_v38 }
  0xb2   :  { %2324 = vmatprep.subr.bf16.mxu0 %v2323_v42  ;;  %v440_v42 = vld [vmem:[%s3803_s1 + $0xc58] sm:$0xff] }
  0xb3   :  { %2354 = vmatpush3.bf16.msra.mxu1 %v2353_v41  ;;  %v439_v41 = vld [vmem:[%s3803_s1 + $0xc50] sm:$0xff] }
  0xb4   :  { %2356 = vmatprep.subr.bf16.mxu1 %v2355_v46  ;;  %v2387_v43 = vpack.c.bf16 %v440_v42, %v439_v41  ;;  %v2390_v46 = vpack.c.bf16 %v442_v45, %v441_v44 }
  0xb5   :  { %2326 = vmatpush3.bf16.msra.mxu0 %v2325_v52  ;;  %v1461_v52 = vld [vmem:[%s3805_s2] ss:$0 sm:$0xff] }
  0xb6   :  { %2328 = vmatprep.subr.bf16.mxu0 %v2327_v54 }
  0xb7   :  { %2358 = vmatpush3.bf16.msra.mxu1 %v2357_v53 }
  0xb8   :  { %2360 = vmatprep.subr.bf16.mxu1 %v2359_v58 }
  0xb9   :  { %2330 = vmatpush3.bf16.msra.mxu0 %v2329_v0 }
  0xba   :  { %2332 = vmatprep.subr.bf16.mxu0 %v2331_v2  ;;  %v1363_v2 = vld [vmem:[%s3806_s3] sm:$0xff] }
  0xbb   :  { %2362 = vmatpush3.bf16.msra.mxu1 %v2361_v1  ;;  %v2396_v5 = vpack.c.bf16 %v1364_v3, %v1363_v2 }
  0xbc   :  { %2364 = vmatprep.subr.bf16.mxu1 %v2363_v6  ;;  %v1365_v6 = vld [vmem:[%s3806_s3 + $0x10] sm:$0xff] }
  0xbd   :  { %2334 = vmatpush3.bf16.msra.mxu0 %v2333_v12  ;;  %v2399_v9 = vpack.c.bf16 %v1366_v7, %v1365_v6  ;;  %v2402_v12 = vpack.c.bf16 %v1368_v11, %v1367_v10 }
  0xbe   :  { %2336 = vmatprep.subr.bf16.mxu0 %v2335_v14  ;;  %v1370_v14 = vld [vmem:[%s3806_s3 + $0x38] sm:$0xff] }
  0xbf   :  { %2366 = vmatpush3.bf16.msra.mxu1 %v2365_v13  ;;  %v1369_v13 = vld [vmem:[%s3806_s3 + $0x30] sm:$0xff] }
  0xc0   :  { %2368 = vmatprep.subr.bf16.mxu1 %v2367_v17  ;;  %v2405_v15 = vpack.c.bf16 %v1370_v14, %v1369_v13  ;;  %v1372_v17 = vld [vmem:[%s3806_s3 + $0x48] sm:$0xff] }
  0xc1   :  { %2338 = vmatpush3.bf16.msra.mxu0 %v2337_v20  ;;  %v2408_v18 = vpack.c.bf16 %v1372_v17, %v1371_v16  ;;  %v1374_v20 = vld [vmem:[%s3806_s3 + $0x58] sm:$0xff] }
  0xc2   :  { %2371 = vmatprep.subr.bf16.mxu0 %v2422_v26 }
  0xc3   :  { %2370 = vmatpush3.bf16.msra.mxu1 %v2369_v21  ;;  %v2411_v21 = vpack.c.bf16 %v1374_v20, %v1373_v19 }
  0xc4   :  { %2395 = vmatprep.subr.bf16.mxu1 %v2422_v26  ;;  %1217 = vmatmul.mubr.f32.vlgmr.msra.gmra.mrb[10].mxu0 %v40_v24  ;;  %v2414_v24 = vpack.c.bf16 %v1376_v23, %v1375_v22 }
  0xc5   :  { %2373 = vmatpush3.bf16.msra.mxu0 %v2372_v25  ;;  %1949 = vmatprep.mubr.msk.f32.mxu0 %vm2423_vm0, %v2424_v33  ;;  %v1377_v25 = vld [vmem:[%s3806_s3 + $0x70] sm:$0xff] }
  0xc6   :  { %1287 = vmatmul.mubr.f32.vlgmr.msra.gmra.mrb[10].mxu1 %v42_v27  ;;  %2374 = vmatprep.subr.bf16.mxu0 %v2422_v26  ;;  %v1378_v27 = vld [vmem:[%s3806_s3 + $0x78] sm:$0xff] }
  0xc7   :  { %1984 = vmatprep.mubr.msk.f32.mxu1 %vm2423_vm0, %v2424_v33  ;;  %2397 = vmatpush3.bf16.msra.mxu1 %v2396_v5  ;;  %v2417_v29 = vpack.c.bf16 %v1378_v27, %v1377_v25 }
  0xc8   :  { %2398 = vmatprep.subr.bf16.mxu1 %v2422_v26 }
  0xc9   :  { %2376 = vmatpush3.bf16.msra.mxu0 %v2375_v30 }
  0xca   :  { %2377 = vmatprep.subr.bf16.mxu0 %v2422_v26 }
  0xcb   :  { %2400 = vmatpush3.bf16.msra.mxu1 %v2399_v9 }
  0xcc   :  { %2401 = vmatprep.subr.bf16.mxu1 %v2422_v26 }
  0xcd   :  { %2379 = vmatpush3.bf16.msra.mxu0 %v2378_v34 }
  0xce   :  { %2380 = vmatprep.subr.bf16.mxu0 %v2422_v26 }
  0xcf   :  { %2403 = vmatpush3.bf16.msra.mxu1 %v2402_v12 }
  0xd0   :  { %2404 = vmatprep.subr.bf16.mxu1 %v2422_v26 }
  0xd1   :  { %2382 = vmatpush3.bf16.msra.mxu0 %v2381_v37 }
  0xd2   :  { %2383 = vmatprep.subr.bf16.mxu0 %v2422_v26 }
  0xd3   :  { %2406 = vmatpush3.bf16.msra.mxu1 %v2405_v15 }
  0xd4   :  { %2407 = vmatprep.subr.bf16.mxu1 %v2422_v26 }
  0xd5   :  { %2385 = vmatpush3.bf16.msra.mxu0 %v2384_v40 }
  0xd6   :  { %2386 = vmatprep.subr.bf16.mxu0 %v2422_v26 }
  0xd7   :  { %2409 = vmatpush3.bf16.msra.mxu1 %v2408_v18 }
  0xd8   :  { %2410 = vmatprep.subr.bf16.mxu1 %v2422_v26 }
  0xd9   :  { %2388 = vmatpush3.bf16.msra.mxu0 %v2387_v43 }
  0xda   :  { %2389 = vmatprep.subr.bf16.mxu0 %v2422_v26 }
  0xdb   :  { %2412 = vmatpush3.bf16.msra.mxu1 %v2411_v21 }
  0xdc   :  { %2413 = vmatprep.subr.bf16.mxu1 %v2422_v26 }
  0xdd   :  { %2391 = vmatpush3.bf16.msra.mxu0 %v2390_v46 }
  0xde   :  { %2392 = vmatprep.subr.bf16.mxu0 %v2422_v26 }
  0xdf   :  { %2415 = vmatpush3.bf16.msra.mxu1 %v2414_v24 }
  0xe0   :  { %2416 = vmatprep.subr.bf16.mxu1 %v2422_v26 }
  0xe1   :  { %2394 = vmatpush3.bf16.msra.mxu0 %v2393_v49 }
  0xe3   :  { %2418 = vmatpush3.bf16.msra.mxu1 %v2417_v29 }
  0xe4   :  { %1950 = vmatmul.mubr.f32.vlgmr.msra.gmra.mrb[12].mxu0 %v44_v50 }
  0xf7   :  { %v1495_v51 = vpop.f32.mrb[0].mxu0 }
  0xf8   :  { %v1496_v53 = vpop.f32.mrb[1].mxu0 }
  0xf9   :  { %v1530_v54 = vpop.f32.mrb[0].mxu1  ;;  %v1497_v55 = vadd.f32 %v1496_v53, %v1495_v51 }
  0xfa   :  { %v1531_v56 = vpop.f32.mrb[1].mxu1 }
  0xfb   :  { %v1532_v57 = vadd.f32 %v1531_v56, %v1530_v54  ;;  %v519_v58 = vadd.f32 %v1497_v55, %v1461_v52 }
  0xfd   :  { %v589_v59 = vadd.f32 %v1532_v57, %v519_v58 }
 0x117   :  { %v1565_v60 = vpop.f32.mrb[2].mxu0 }
 0x118   :  { %v1566_v61 = vpop.f32.mrb[3].mxu0 }
 0x119   :  { %v1600_v62 = vpop.f32.mrb[2].mxu1  ;;  %v1567_v63 = vadd.f32 %v1566_v61, %v1565_v60 }
 0x11a   :  { %v1601_v0 = vpop.f32.mrb[3].mxu1 }
 0x11b   :  { %v1602_v1 = vadd.f32 %v1601_v0, %v1600_v62  ;;  %v659_v4 = vadd.f32 %v1567_v63, %v589_v59  ;;  %v1462_v0 = vld [vmem:[%s3807_s4] ss:$0 sm:$0xff] }
 0x11d   :  { %v729_v8 = vadd.f32 %v1602_v1, %v659_v4 }
 0x137   :  { %v1635_v28 = vpop.f32.mrb[4].mxu0 }
 0x138   :  { %v1636_v30 = vpop.f32.mrb[5].mxu0 }
 0x139   :  { %v1670_v31 = vpop.f32.mrb[4].mxu1  ;;  %v1637_v32 = vadd.f32 %v1636_v30, %v1635_v28 }
 0x13a   :  { %v1671_v33 = vpop.f32.mrb[5].mxu1 }
 0x13b   :  { %v1672_v34 = vadd.f32 %v1671_v33, %v1670_v31  ;;  %v799_v35 = vadd.f32 %v1637_v32, %v729_v8 }
 0x13d   :  { %v869_v36 = vadd.f32 %v1672_v34, %v799_v35 }
 0x157   :  { %v1705_v37 = vpop.f32.mrb[6].mxu0 }
 0x158   :  { %v1706_v26 = vpop.f32.mrb[7].mxu0 }
 0x159   :  { %v1740_v38 = vpop.f32.mrb[6].mxu1  ;;  %v1707_v39 = vadd.f32 %v1706_v26, %v1705_v37 }
 0x15a   :  { %v1741_v40 = vpop.f32.mrb[7].mxu1 }
 0x15b   :  { %v1742_v41 = vadd.f32 %v1741_v40, %v1740_v38  ;;  %v939_v42 = vadd.f32 %v1707_v39, %v869_v36 }
 0x15d   :  { %v1009_v43 = vadd.f32 %v1742_v41, %v939_v42 }
 0x177   :  { %v1775_v44 = vpop.f32.mrb[8].mxu0 }
 0x178   :  { %v1776_v45 = vpop.f32.mrb[9].mxu0 }
 0x179   :  { %v1810_v46 = vpop.f32.mrb[8].mxu1  ;;  %v1777_v47 = vadd.f32 %v1776_v45, %v1775_v44 }
 0x17a   :  { %v1811_v48 = vpop.f32.mrb[9].mxu1 }
 0x17b   :  { %v1812_v49 = vadd.f32 %v1811_v48, %v1810_v46  ;;  %v1079_v50 = vadd.f32 %v1777_v47, %v1009_v43 }
 0x17d   :  { %v1149_v51 = vadd.f32 %v1812_v49, %v1079_v50 }
 0x197   :  { %v1845_v52 = vpop.f32.mrb[10].mxu0 }
 0x198   :  { %v1846_v53 = vpop.f32.mrb[11].mxu0 }
 0x199   :  { %v1880_v54 = vpop.f32.mrb[10].mxu1  ;;  %v1847_v55 = vadd.f32 %v1846_v53, %v1845_v52 }
 0x19a   :  { %v1881_v56 = vpop.f32.mrb[11].mxu1 }
 0x19b   :  { %v1882_v57 = vadd.f32 %v1881_v56, %v1880_v54  ;;  %v1219_v58 = vadd.f32 %v1847_v55, %v1149_v51 }
 0x19d   :  { %v1289_v59 = vadd.f32 %v1882_v57, %v1219_v58 }
 0x1b7   :  { %v1358_v60 = vpop.f32.mrb[12].mxu0 }
 0x1b8   :  { %v1359_v61 = vadd.f32 %v1358_v60, %v1289_v59  ;;  %v1951_v62 = vpop.f32.mrb[13].mxu0 }
 0x1ba   :  { %v1362_v63 = vmax.f32 %v1359_v61, 0.0 }
 0x1bc   :  { %1985 = vmatmul.mubr.f32.vlgmr.msra.gmra.mrb[12].mxu1 %v1362_v63 }
 0x28f   :  { %v1452_v1 = vpop.f32.mrb[12].mxu1 }
 0x290   :  { %v1453_v2 = vadd.f32 %v1462_v0, %v1452_v1  ;;  %v1986_v3 = vpop.f32.mrb[13].mxu1 }
 0x292   :  { %1456 = vst [vmem:[%s3808_s5] sm:$0xff] %v1453_v2 }

</bundles_post_ra>
